<compile_context>
chip_gen: v7x
topology: tpu7x:2x2x1
jax: 0.10.0
libtpu: 0.0.40
codegen_flags: <defaults>
</compile_context>

<pallas_src>
import functools
import math

import jax
import jax.numpy as jnp
from jax.experimental import pallas as pl
from jax.experimental.pallas import tpu as pltpu


# ----------------------------------------------------------------------------
# helpers
# ----------------------------------------------------------------------------
def _round_up(x, m):
    return (x + m - 1) // m * m


def _row_blocks(M, max_tile=512):
    """Pick a row tile. Block == full dim if small, else a /8 tile + padding."""
    if M <= max_tile:
        return M, M                      # single block covering the full dim
    tm = max_tile                        # multiple of 8 (and of 256)
    return tm, _round_up(M, tm)


_PAR = pltpu.CompilerParams(dimension_semantics=("parallel",))


# ----------------------------------------------------------------------------
# Pallas kernels
# ----------------------------------------------------------------------------
def _linear_kernel(x_ref, w_ref, b_ref, o_ref, *, activation):
    x = x_ref[...].astype(jnp.bfloat16)              # MXU operands in bf16
    w = w_ref[...]                                   # stored bf16
    y = jnp.dot(x, w, preferred_element_type=jnp.float32) + b_ref[...]
    if activation == "relu":
        y = jnp.maximum(y, 0.0)
    o_ref[...] = y.astype(o_ref.dtype)


def linear(x, w, b, activation="none"):
    """x: [M, K] f32, w: [K, N] bf16, b: [1, N] f32 -> [M, N] f32."""
    M, K = x.shape
    N = w.shape[1]
    tm, Mp = _row_blocks(M)
    xp = x if Mp == M else jnp.pad(x, ((0, Mp - M), (0, 0)))
    out = pl.pallas_call(
        functools.partial(_linear_kernel, activation=activation),
        out_shape=jax.ShapeDtypeStruct((Mp, N), jnp.float32),
        grid=(Mp // tm,),
        in_specs=[
            pl.BlockSpec((tm, K), lambda i: (i, 0)),
            pl.BlockSpec((K, N), lambda i: (0, 0)),
            pl.BlockSpec((1, N), lambda i: (0, 0)),
        ],
        out_specs=pl.BlockSpec((tm, N), lambda i: (i, 0)),
        compiler_params=_PAR,
    )(xp, w, b)
    return out if Mp == M else out[:M]


def _ln_kernel(x_ref, g_ref, b_ref, o_ref, *, eps):
    x = x_ref[...]                                    # f32 elementwise path
    mu = jnp.mean(x, axis=-1, keepdims=True)
    var = jnp.mean((x - mu) ** 2, axis=-1, keepdims=True)
    y = (x - mu) * jax.lax.rsqrt(var + eps)
    o_ref[...] = (y * g_ref[...] + b_ref[...]).astype(o_ref.dtype)


def layernorm(x, p, eps=1e-5):
    shape = x.shape
    D = shape[-1]
    x2 = x.reshape(-1, D)
    M = x2.shape[0]
    tm, Mp = _row_blocks(M)
    if Mp != M:
        x2 = jnp.pad(x2, ((0, Mp - M), (0, 0)))
    out = pl.pallas_call(
        functools.partial(_ln_kernel, eps=eps),
        out_shape=jax.ShapeDtypeStruct((Mp, D), jnp.float32),
        grid=(Mp // tm,),
        in_specs=[
            pl.BlockSpec((tm, D), lambda i: (i, 0)),
            pl.BlockSpec((1, D), lambda i: (0, 0)),
            pl.BlockSpec((1, D), lambda i: (0, 0)),
        ],
        out_specs=pl.BlockSpec((tm, D), lambda i: (i, 0)),
        compiler_params=_PAR,
    )(x2, p["g"], p["b"])
    out = out if Mp == M else out[:M]
    return out.reshape(shape)


def _add_ln_kernel(x_ref, y_ref, g_ref, b_ref, o_ref, *, eps):
    z = x_ref[...] + y_ref[...]                       # fused residual + LN
    mu = jnp.mean(z, axis=-1, keepdims=True)
    var = jnp.mean((z - mu) ** 2, axis=-1, keepdims=True)
    zn = (z - mu) * jax.lax.rsqrt(var + eps)
    o_ref[...] = (zn * g_ref[...] + b_ref[...]).astype(o_ref.dtype)


def add_layernorm(x, y, p, eps=1e-5):
    """LayerNorm(x + y), fused."""
    shape = x.shape
    D = shape[-1]
    x2 = x.reshape(-1, D)
    y2 = y.reshape(-1, D)
    M = x2.shape[0]
    tm, Mp = _row_blocks(M)
    if Mp != M:
        x2 = jnp.pad(x2, ((0, Mp - M), (0, 0)))
        y2 = jnp.pad(y2, ((0, Mp - M), (0, 0)))
    out = pl.pallas_call(
        functools.partial(_add_ln_kernel, eps=eps),
        out_shape=jax.ShapeDtypeStruct((Mp, D), jnp.float32),
        grid=(Mp // tm,),
        in_specs=[
            pl.BlockSpec((tm, D), lambda i: (i, 0)),
            pl.BlockSpec((tm, D), lambda i: (i, 0)),
            pl.BlockSpec((1, D), lambda i: (0, 0)),
            pl.BlockSpec((1, D), lambda i: (0, 0)),
        ],
        out_specs=pl.BlockSpec((tm, D), lambda i: (i, 0)),
        compiler_params=_PAR,
    )(x2, y2, p["g"], p["b"])
    out = out if Mp == M else out[:M]
    return out.reshape(shape)


def _ffn_res_ln_kernel(x_ref, w1_ref, b1_ref, w2_ref, b2_ref, g_ref, be_ref,
                       o_ref, *, eps):
    # LayerNorm(x + relu(x@W1 + b1)@W2 + b2), single pass, no HBM intermediate.
    x = x_ref[...]
    h = jnp.dot(x.astype(jnp.bfloat16), w1_ref[...],
                preferred_element_type=jnp.float32) + b1_ref[...]
    h = jnp.maximum(h, 0.0)
    y = jnp.dot(h.astype(jnp.bfloat16), w2_ref[...],
                preferred_element_type=jnp.float32) + b2_ref[...]
    z = x + y
    mu = jnp.mean(z, axis=-1, keepdims=True)
    var = jnp.mean((z - mu) ** 2, axis=-1, keepdims=True)
    zn = (z - mu) * jax.lax.rsqrt(var + eps)
    o_ref[...] = (zn * g_ref[...] + be_ref[...]).astype(o_ref.dtype)


def ffn_residual_ln(x, p, eps=1e-5):
    """x: [B, L, E] -> LayerNorm(x + FFN(x)) with both weight slabs VMEM-resident."""
    B, L, E = x.shape
    FF = p["lin1_w"].shape[1]
    x2 = x.reshape(B * L, E)
    M = x2.shape[0]
    # smaller row tile here: the [tm, FF] intermediate lives in VMEM (v7x: 64 MiB)
    tm, Mp = _row_blocks(M, max_tile=256)
    if Mp != M:
        x2 = jnp.pad(x2, ((0, Mp - M), (0, 0)))
    out = pl.pallas_call(
        functools.partial(_ffn_res_ln_kernel, eps=eps),
        out_shape=jax.ShapeDtypeStruct((Mp, E), jnp.float32),
        grid=(Mp // tm,),
        in_specs=[
            pl.BlockSpec((tm, E), lambda i: (i, 0)),
            pl.BlockSpec((E, FF), lambda i: (0, 0)),
            pl.BlockSpec((1, FF), lambda i: (0, 0)),
            pl.BlockSpec((FF, E), lambda i: (0, 0)),
            pl.BlockSpec((1, E), lambda i: (0, 0)),
            pl.BlockSpec((1, E), lambda i: (0, 0)),
            pl.BlockSpec((1, E), lambda i: (0, 0)),
        ],
        out_specs=pl.BlockSpec((tm, E), lambda i: (i, 0)),
        compiler_params=_PAR,
    )(x2, p["lin1_w"], p["lin1_b"], p["lin2_w"], p["lin2_b"],
      p["ln3"]["g"], p["ln3"]["b"])
    out = out if Mp == M else out[:M]
    return out.reshape(B, L, E)


def _mha_core(q, k, v, bias, nhead):
    """q: [Lq, E], k/v: [Lk, E], bias: [1, Lk] or None. All heads in-kernel,
    lane-dense [Lq, E] result. Scale is pre-folded into W_q."""
    Lq, E = q.shape
    hd = E // nhead
    outs = []
    for h in range(nhead):
        sl = slice(h * hd, (h + 1) * hd)
        qh = q[:, sl].astype(jnp.bfloat16)
        kh = k[:, sl].astype(jnp.bfloat16)
        vh = v[:, sl].astype(jnp.bfloat16)
        s = jnp.dot(qh, kh.T, preferred_element_type=jnp.float32)
        if bias is not None:
            s = s + bias
        m = jnp.max(s, axis=-1, keepdims=True)
        p = jnp.exp(s - m)                                   # f32 softmax (v5e-safe)
        denom = jnp.sum(p, axis=-1, keepdims=True)
        p = p * pl.reciprocal(denom, approx=True)            # EUP slot, ~free
        outs.append(jnp.dot(p.astype(jnp.bfloat16), vh,
                            preferred_element_type=jnp.float32))
    return jnp.concatenate(outs, axis=-1)                    # [Lq, E] lane-dense


def _attn_kernel_nomask(q_ref, k_ref, v_ref, o_ref, *, nhead):
    o_ref[0] = _mha_core(q_ref[0], k_ref[0], v_ref[0], None, nhead).astype(o_ref.dtype)


def _attn_kernel_mask(q_ref, k_ref, v_ref, b_ref, o_ref, *, nhead):
    o_ref[0] = _mha_core(q_ref[0], k_ref[0], v_ref[0], b_ref[0], nhead).astype(o_ref.dtype)


def _sdpa(q, k, v, bias, nhead):
    """q: [B, Lq, E], k/v: [B, Lk, E], bias: [B, 1, Lk] or None -> [B, Lq, E]."""
    B, Lq, E = q.shape
    Lk = k.shape[1]
    common = dict(
        out_shape=jax.ShapeDtypeStruct((B, Lq, E), jnp.float32),
        grid=(B,),
        out_specs=pl.BlockSpec((1, Lq, E), lambda b: (b, 0, 0)),
        compiler_params=_PAR,
    )
    qkv_specs = [
        pl.BlockSpec((1, Lq, E), lambda b: (b, 0, 0)),
        pl.BlockSpec((1, Lk, E), lambda b: (b, 0, 0)),
        pl.BlockSpec((1, Lk, E), lambda b: (b, 0, 0)),
    ]
    if bias is None:
        return pl.pallas_call(
            functools.partial(_attn_kernel_nomask, nhead=nhead),
            in_specs=qkv_specs, **common)(q, k, v)
    return pl.pallas_call(
        functools.partial(_attn_kernel_mask, nhead=nhead),
        in_specs=qkv_specs + [pl.BlockSpec((1, 1, Lk), lambda b: (b, 0, 0))],
        **common)(q, k, v, bias)


# ----------------------------------------------------------------------------
# Multi-head attention / decoder layer (batch-first [B, L, E] glue)
# ----------------------------------------------------------------------------
def mha(q_in, k_in, v_in, p, nhead, key_padding_mask=None, fuse_qk=False):
    """nn.MultiheadAttention semantics; inputs are batch-first [B, L, E].
    1/sqrt(head_dim) scale is folded into W_q / b_q at init time."""
    B, Lq, E = q_in.shape
    Lk = k_in.shape[1]
    if fuse_qk:
        # self-attention: q and k share the same input -> one [E, 2E] matmul
        qk = linear(q_in.reshape(B * Lq, E), p["w_qk"], p["b_qk"])
        q = qk[:, :E].reshape(B, Lq, E)
        k = qk[:, E:].reshape(B, Lq, E)
    else:
        q = linear(q_in.reshape(B * Lq, E), p["w_q"], p["b_q"]).reshape(B, Lq, E)
        k = linear(k_in.reshape(B * Lk, E), p["w_k"], p["b_k"]).reshape(B, Lk, E)
    v = linear(v_in.reshape(B * Lk, E), p["w_v"], p["b_v"]).reshape(B, Lk, E)

    bias = None
    if key_padding_mask is not None:
        # NOTE: a fully-masked row degenerates to a uniform distribution (same
        # as the PyTorch fallback behaviour).
        bias = jnp.where(key_padding_mask, jnp.float32(-1e9),
                         jnp.float32(0.0))[:, None, :]       # [B, 1, Lk]

    out = _sdpa(q, k, v, bias, nhead)                        # [B, Lq, E]
    return linear(out.reshape(B * Lq, E), p["w_o"], p["b_o"]).reshape(B, Lq, E)


def decoder_layer(tgt, memory, p, pos, query_pos,
                  memory_key_padding_mask, tgt_key_padding_mask, nhead):
    """DETR TransformerDecoderLayer.forward_post (dropout = identity)."""
    qk = tgt if query_pos is None else tgt + query_pos
    tgt2 = mha(qk, qk, tgt, p["self_attn"], nhead,
               key_padding_mask=tgt_key_padding_mask, fuse_qk=True)
    tgt = add_layernorm(tgt, tgt2, p["ln1"])

    q = tgt if query_pos is None else tgt + query_pos
    k = memory if pos is None else memory + pos
    tgt2 = mha(q, k, memory, p["cross_attn"], nhead,
               key_padding_mask=memory_key_padding_mask)
    tgt = add_layernorm(tgt, tgt2, p["ln2"])

    tgt = ffn_residual_ln(tgt, p)                            # fused FFN+res+LN3
    return tgt


def transformer_decoder_forward(params, tgt, memory, *, nhead,
                                tgt_mask=None, memory_mask=None,
                                tgt_key_padding_mask=None,
                                memory_key_padding_mask=None,
                                pos=None, query_pos=None,
                                return_intermediate=True):
    """PyTorch TransformerDecoder.forward semantics.
    tgt/memory/pos/query_pos are seq-first [L, B, E] (PyTorch convention);
    internally everything is batch-first to keep attention lane-dense."""
    # TODO(synk): additive attn masks (tgt_mask / memory_mask) are not
    # implemented; the source model always passes None for both.
    del tgt_mask, memory_mask

    tgt_b = jnp.transpose(tgt, (1, 0, 2))
    mem_b = jnp.transpose(memory, (1, 0, 2))
    pos_b = None if pos is None else jnp.transpose(pos, (1, 0, 2))

    output = tgt_b
    intermediate = []
    for i, lp in enumerate(params["layers"]):
        if query_pos is not None and query_pos.ndim == 4:
            qp = query_pos[i]                                # per-layer query pos
        else:
            qp = query_pos
        qp_b = None if qp is None else jnp.transpose(qp, (1, 0, 2))
        output = decoder_layer(output, mem_b, lp, pos_b, qp_b,
                               memory_key_padding_mask, tgt_key_padding_mask,
                               nhead)
        if return_intermediate:
            intermediate.append(layernorm(output, params["norm"]))

    if params["norm"] is not None and not return_intermediate:
        output = layernorm(output, params["norm"])
    # (return_intermediate + norm: the reference pops and re-appends
    #  norm(output), which equals intermediate[-1] since output is unchanged.)

    if return_intermediate:
        stacked = jnp.stack(intermediate)                    # [nl, B, Lq, E]
        return jnp.transpose(stacked, (0, 2, 1, 3))          # [nl, Lq, B, E]
    return jnp.transpose(output, (1, 0, 2))                  # [Lq, B, E]


# ----------------------------------------------------------------------------
# Parameter init (deterministic, synthetic; weights stored bf16 for MXU)
# ----------------------------------------------------------------------------
class KeyGen:
    def __init__(self, seed):
        self.key = jax.random.PRNGKey(seed)

    def __call__(self):
        self.key, sub = jax.random.split(self.key)
        return sub


def init_ln(d):
    return dict(g=jnp.ones((1, d), jnp.float32), b=jnp.zeros((1, d), jnp.float32))


def init_mha(kg, e, nhead, scale=0.05):
    hd = e // nhead
    qk_scale = 1.0 / math.sqrt(hd)

    def w():
        return jax.random.normal(kg(), (e, e), jnp.float32) * scale

    w_q = w() * qk_scale          # fold 1/sqrt(hd) into the Q projection
    w_k, w_v, w_o = w(), w(), w()
    b_q = jnp.zeros((1, e), jnp.float32)      # (already-scaled) bias
    b_k = jnp.zeros((1, e), jnp.float32)
    b_v = jnp.zeros((1, e), jnp.float32)
    b_o = jnp.zeros((1, e), jnp.float32)
    return dict(
        w_q=w_q.astype(jnp.bfloat16), b_q=b_q,
        w_k=w_k.astype(jnp.bfloat16), b_k=b_k,
        w_v=w_v.astype(jnp.bfloat16), b_v=b_v,
        w_o=w_o.astype(jnp.bfloat16), b_o=b_o,
        w_qk=jnp.concatenate([w_q, w_k], axis=1).astype(jnp.bfloat16),
        b_qk=jnp.concatenate([b_q, b_k], axis=1),
    )


def init_dec_layer(kg, d, nhead, ff, scale=0.05):
    return dict(
        self_attn=init_mha(kg, d, nhead, scale),
        cross_attn=init_mha(kg, d, nhead, scale),
        ln1=init_ln(d), ln2=init_ln(d), ln3=init_ln(d),
        lin1_w=(jax.random.normal(kg(), (d, ff), jnp.float32) * scale
                ).astype(jnp.bfloat16),
        lin1_b=jnp.zeros((1, ff), jnp.float32),
        lin2_w=(jax.random.normal(kg(), (ff, d), jnp.float32) * scale
                ).astype(jnp.bfloat16),
        lin2_b=jnp.zeros((1, d), jnp.float32),
    )


def init_decoder_params(seed, d_model, nhead, num_layers, dim_ff):
    kg = KeyGen(seed)
    return dict(
        layers=[init_dec_layer(kg, d_model, nhead, dim_ff)
                for _ in range(num_layers)],
        norm=init_ln(d_model),
    )


# ----------------------------------------------------------------------------
# main
# ----------------------------------------------------------------------------
if __name__ == "__main__":
    B, E, nhead = 2, 32, 4          # batch, d_model, heads (head_dim = 8)
    num_layers = 2
    dim_ff = 64
    Lq = 8                          # number of object queries (tgt length)
    Lk = 16                         # memory length (e.g. H*W = 4*4)

    params = init_decoder_params(0, E, nhead, num_layers, dim_ff)

    key = jax.random.PRNGKey(0)
    ks = jax.random.split(key, 4)
    tgt = jnp.zeros((Lq, B, E), jnp.float32)                     # DETR: zero tgt
    memory = jax.random.normal(ks[0], (Lk, B, E), jnp.float32)
    pos = jax.random.normal(ks[1], (Lk, B, E), jnp.float32)
    query_pos = jax.random.normal(ks[2], (Lq, B, E), jnp.float32)
    memory_key_padding_mask = jnp.zeros((B, Lk), jnp.bool_).at[1, -2:].set(True)

    fwd = jax.jit(functools.partial(transformer_decoder_forward,
                                    nhead=nhead, return_intermediate=True))
    out = fwd(params, tgt, memory,
              memory_key_padding_mask=memory_key_padding_mask,
              pos=pos, query_pos=query_pos)
    out = jax.block_until_ready(out)

    assert out.shape == (num_layers, Lq, B, E), out.shape
    assert bool(jnp.all(jnp.isfinite(out)))
    print("KERNEL_OK")
</pallas_src>

<mosaic_0001>
module attributes {stable_mosaic.version = 11 : i64} {
  func.func @_linear_kernel(%arg0: i32, %arg1: memref<16x32xf32, #tpu.memory_space<vmem>>, %arg2: memref<32x64xbf16, #tpu.memory_space<vmem>>, %arg3: memref<1x64xf32, #tpu.memory_space<vmem>>, %arg4: memref<16x64xf32, #tpu.memory_space<vmem>>) attributes {dimension_semantics = [#tpu.dimension_semantics<parallel>], iteration_bounds = array<i64: 1>, scalar_prefetch = 0 : i64, scratch_operands = 0 : i64, tpu.core_type = #tpu.core_type<tc>, window_params = [{transform_indices = @transform_0, window_bounds = array<i64: 16, 32>}, {pipeline_mode = #tpu.pipeline_mode<synchronous>, transform_indices = @transform_1, window_bounds = array<i64: 32, 64>}, {pipeline_mode = #tpu.pipeline_mode<synchronous>, transform_indices = @transform_2, window_bounds = array<i64: 1, 64>}, {transform_indices = @transform_3, window_bounds = array<i64: 16, 64>}]} {
    %c0 = arith.constant 0 : index
    %c0_0 = arith.constant 0 : index
    %0 = vector.load %arg1[%c0, %c0_0] : memref<16x32xf32, #tpu.memory_space<vmem>>, vector<16x32xf32>
    %1 = arith.truncf %0 : vector<16x32xf32> to vector<16x32xbf16>
    %c0_1 = arith.constant 0 : index
    %c0_2 = arith.constant 0 : index
    %2 = vector.load %arg2[%c0_1, %c0_2] : memref<32x64xbf16, #tpu.memory_space<vmem>>, vector<32x64xbf16>
    %cst = arith.constant dense<0.000000e+00> : vector<16x64xf32>
    %3 = tpu.matmul %1, %2, %cst {dimension_numbers = #tpu.dot_dimension_numbers<[1], [0], [0], [1], [0, 0, 1, 1], [], []>} : vector<16x32xbf16>, vector<32x64xbf16>, vector<16x64xf32> -> vector<16x64xf32>
    %c0_3 = arith.constant 0 : index
    %c0_4 = arith.constant 0 : index
    %4 = vector.load %arg3[%c0_3, %c0_4] : memref<1x64xf32, #tpu.memory_space<vmem>>, vector<1x64xf32>
    %5 = vector.broadcast %4 : vector<1x64xf32> to vector<16x64xf32>
    %6 = arith.addf %3, %5 : vector<16x64xf32>
    %c0_5 = arith.constant 0 : index
    %c0_6 = arith.constant 0 : index
    %7 = vector.load %arg4[%c0_5, %c0_6] : memref<16x64xf32, #tpu.memory_space<vmem>>, vector<16x64xf32>
    tpu.vector_store %arg4[%c0_5, %c0_6], %6 {strides = array<i32>} : memref<16x64xf32, #tpu.memory_space<vmem>>, vector<16x64xf32>,
    return
  }
  func.func @transform_0(%arg0: i32) -> (i32, i32) {
    %c0_i32 = arith.constant 0 : i32
    %c0_i32_0 = arith.constant 0 : i32
    return %arg0, %c0_i32 : i32, i32
  }
  func.func @transform_1(%arg0: i32) -> (i32, i32) {
    %c0_i32 = arith.constant 0 : i32
    %c0_i32_0 = arith.constant 0 : i32
    %c0_i32_1 = arith.constant 0 : i32
    return %c0_i32, %c0_i32_0 : i32, i32
  }
  func.func @transform_2(%arg0: i32) -> (i32, i32) {
    %c0_i32 = arith.constant 0 : i32
    %c0_i32_0 = arith.constant 0 : i32
    %c0_i32_1 = arith.constant 0 : i32
    return %c0_i32, %c0_i32_0 : i32, i32
  }
  func.func @transform_3(%arg0: i32) -> (i32, i32) {
    %c0_i32 = arith.constant 0 : i32
    %c0_i32_0 = arith.constant 0 : i32
    return %arg0, %c0_i32 : i32, i32
  }
}

module attributes {stable_mosaic.version = 11 : i64} {
  func.func @_linear_kernel(%arg0: i32, %arg1: memref<16x32xf32, #tpu.memory_space<vmem>>, %arg2: memref<32x32xbf16, #tpu.memory_space<vmem>>, %arg3: memref<1x32xf32, #tpu.memory_space<vmem>>, %arg4: memref<16x32xf32, #tpu.memory_space<vmem>>) attributes {dimension_semantics = [#tpu.dimension_semantics<parallel>], iteration_bounds = array<i64: 1>, scalar_prefetch = 0 : i64, scratch_operands = 0 : i64, tpu.core_type = #tpu.core_type<tc>, window_params = [{transform_indices = @transform_0, window_bounds = array<i64: 16, 32>}, {pipeline_mode = #tpu.pipeline_mode<synchronous>, transform_indices = @transform_1, window_bounds = array<i64: 32, 32>}, {pipeline_mode = #tpu.pipeline_mode<synchronous>, transform_indices = @transform_2, window_bounds = array<i64: 1, 32>}, {transform_indices = @transform_3, window_bounds = array<i64: 16, 32>}]} {
    %c0 = arith.constant 0 : index
    %c0_0 = arith.constant 0 : index
    %0 = vector.load %arg1[%c0, %c0_0] : memref<16x32xf32, #tpu.memory_space<vmem>>, vector<16x32xf32>
    %1 = arith.truncf %0 : vector<16x32xf32> to vector<16x32xbf16>
    %c0_1 = arith.constant 0 : index
    %c0_2 = arith.constant 0 : index
    %2 = vector.load %arg2[%c0_1, %c0_2] : memref<32x32xbf16, #tpu.memory_space<vmem>>, vector<32x32xbf16>
    %cst = arith.constant dense<0.000000e+00> : vector<16x32xf32>
    %3 = tpu.matmul %1, %2, %cst {dimension_numbers = #tpu.dot_dimension_numbers<[1], [0], [0], [1], [0, 0, 1, 1], [], []>} : vector<16x32xbf16>, vector<32x32xbf16>, vector<16x32xf32> -> vector<16x32xf32>
    %c0_3 = arith.constant 0 : index
    %c0_4 = arith.constant 0 : index
    %4 = vector.load %arg3[%c0_3, %c0_4] : memref<1x32xf32, #tpu.memory_space<vmem>>, vector<1x32xf32>
    %5 = vector.broadcast %4 : vector<1x32xf32> to vector<16x32xf32>
    %6 = arith.addf %3, %5 : vector<16x32xf32>
    %c0_5 = arith.constant 0 : index
    %c0_6 = arith.constant 0 : index
    %7 = vector.load %arg4[%c0_5, %c0_6] : memref<16x32xf32, #tpu.memory_space<vmem>>, vector<16x32xf32>
    tpu.vector_store %arg4[%c0_5, %c0_6], %6 {strides = array<i32>} : memref<16x32xf32, #tpu.memory_space<vmem>>, vector<16x32xf32>,
    return
  }
  func.func @transform_0(%arg0: i32) -> (i32, i32) {
    %c0_i32 = arith.constant 0 : i32
    %c0_i32_0 = arith.constant 0 : i32
    return %arg0, %c0_i32 : i32, i32
  }
  func.func @transform_1(%arg0: i32) -> (i32, i32) {
    %c0_i32 = arith.constant 0 : i32
    %c0_i32_0 = arith.constant 0 : i32
    %c0_i32_1 = arith.constant 0 : i32
    return %c0_i32, %c0_i32_0 : i32, i32
  }
  func.func @transform_2(%arg0: i32) -> (i32, i32) {
    %c0_i32 = arith.constant 0 : i32
    %c0_i32_0 = arith.constant 0 : i32
    %c0_i32_1 = arith.constant 0 : i32
    return %c0_i32, %c0_i32_0 : i32, i32
  }
  func.func @transform_3(%arg0: i32) -> (i32, i32) {
    %c0_i32 = arith.constant 0 : i32
    %c0_i32_0 = arith.constant 0 : i32
    return %arg0, %c0_i32 : i32, i32
  }
}

module attributes {stable_mosaic.version = 11 : i64} {
  func.func @_add_ln_kernel(%arg0: i32, %arg1: memref<16x32xf32, #tpu.memory_space<vmem>>, %arg2: memref<16x32xf32, #tpu.memory_space<vmem>>, %arg3: memref<1x32xf32, #tpu.memory_space<vmem>>, %arg4: memref<1x32xf32, #tpu.memory_space<vmem>>, %arg5: memref<16x32xf32, #tpu.memory_space<vmem>>) attributes {dimension_semantics = [#tpu.dimension_semantics<parallel>], iteration_bounds = array<i64: 1>, scalar_prefetch = 0 : i64, scratch_operands = 0 : i64, tpu.core_type = #tpu.core_type<tc>, window_params = [{transform_indices = @transform_0, window_bounds = array<i64: 16, 32>}, {transform_indices = @transform_1, window_bounds = array<i64: 16, 32>}, {pipeline_mode = #tpu.pipeline_mode<synchronous>, transform_indices = @transform_2, window_bounds = array<i64: 1, 32>}, {pipeline_mode = #tpu.pipeline_mode<synchronous>, transform_indices = @transform_3, window_bounds = array<i64: 1, 32>}, {transform_indices = @transform_4, window_bounds = array<i64: 16, 32>}]} {
    %c0 = arith.constant 0 : index
    %c0_0 = arith.constant 0 : index
    %0 = vector.load %arg1[%c0, %c0_0] : memref<16x32xf32, #tpu.memory_space<vmem>>, vector<16x32xf32>
    %c0_1 = arith.constant 0 : index
    %c0_2 = arith.constant 0 : index
    %1 = vector.load %arg2[%c0_1, %c0_2] : memref<16x32xf32, #tpu.memory_space<vmem>>, vector<16x32xf32>
    %2 = arith.addf %0, %1 : vector<16x32xf32>
    %cst = arith.constant dense<0.000000e+00> : vector<16xf32>
    %3 = vector.multi_reduction <add>, %2, %cst [1] : vector<16x32xf32> to vector<16xf32>
    %4 = vector.shape_cast %3 : vector<16xf32> to vector<16x1xf32>
    %cst_3 = arith.constant 3.200000e+01 : f32
    %5 = vector.broadcast %cst_3 : f32 to vector<16x1xf32>
    %6 = arith.divf %4, %5 : vector<16x1xf32>
    %7 = vector.broadcast %6 : vector<16x1xf32> to vector<16x32xf32>
    %8 = arith.subf %2, %7 : vector<16x32xf32>
    %9 = arith.mulf %8, %8 : vector<16x32xf32>
    %cst_4 = arith.constant dense<0.000000e+00> : vector<16xf32>
    %10 = vector.multi_reduction <add>, %9, %cst_4 [1] : vector<16x32xf32> to vector<16xf32>
    %11 = vector.shape_cast %10 : vector<16xf32> to vector<16x1xf32>
    %cst_5 = arith.constant 3.200000e+01 : f32
    %12 = vector.broadcast %cst_5 : f32 to vector<16x1xf32>
    %13 = arith.divf %11, %12 : vector<16x1xf32>
    %14 = vector.broadcast %6 : vector<16x1xf32> to vector<16x32xf32>
    %15 = arith.subf %2, %14 : vector<16x32xf32>
    %cst_6 = arith.constant 9.99999974E-6 : f32
    %16 = vector.broadcast %cst_6 : f32 to vector<16x1xf32>
    %17 = arith.addf %13, %16 : vector<16x1xf32>
    %18 = math.rsqrt %17 : vector<16x1xf32>
    %19 = vector.broadcast %18 : vector<16x1xf32> to vector<16x32xf32>
    %20 = arith.mulf %15, %19 : vector<16x32xf32>
    %c0_7 = arith.constant 0 : index
    %c0_8 = arith.constant 0 : index
    %21 = vector.load %arg3[%c0_7, %c0_8] : memref<1x32xf32, #tpu.memory_space<vmem>>, vector<1x32xf32>
    %22 = vector.broadcast %21 : vector<1x32xf32> to vector<16x32xf32>
    %23 = arith.mulf %20, %22 : vector<16x32xf32>
    %c0_9 = arith.constant 0 : index
    %c0_10 = arith.constant 0 : index
    %24 = vector.load %arg4[%c0_9, %c0_10] : memref<1x32xf32, #tpu.memory_space<vmem>>, vector<1x32xf32>
    %25 = vector.broadcast %24 : vector<1x32xf32> to vector<16x32xf32>
    %26 = arith.addf %23, %25 : vector<16x32xf32>
    %c0_11 = arith.constant 0 : index
    %c0_12 = arith.constant 0 : index
    %27 = vector.load %arg5[%c0_11, %c0_12] : memref<16x32xf32, #tpu.memory_space<vmem>>, vector<16x32xf32>
    tpu.vector_store %arg5[%c0_11, %c0_12], %26 {strides = array<i32>} : memref<16x32xf32, #tpu.memory_space<vmem>>, vector<16x32xf32>,
    return
  }
  func.func @transform_0(%arg0: i32) -> (i32, i32) {
    %c0_i32 = arith.constant 0 : i32
    %c0_i32_0 = arith.constant 0 : i32
    return %arg0, %c0_i32 : i32, i32
  }
  func.func @transform_1(%arg0: i32) -> (i32, i32) {
    %c0_i32 = arith.constant 0 : i32
    %c0_i32_0 = arith.constant 0 : i32
    return %arg0, %c0_i32 : i32, i32
  }
  func.func @transform_2(%arg0: i32) -> (i32, i32) {
    %c0_i32 = arith.constant 0 : i32
    %c0_i32_0 = arith.constant 0 : i32
    %c0_i32_1 = arith.constant 0 : i32
    return %c0_i32, %c0_i32_0 : i32, i32
  }
  func.func @transform_3(%arg0: i32) -> (i32, i32) {
    %c0_i32 = arith.constant 0 : i32
    %c0_i32_0 = arith.constant 0 : i32
    %c0_i32_1 = arith.constant 0 : i32
    return %c0_i32, %c0_i32_0 : i32, i32
  }
  func.func @transform_4(%arg0: i32) -> (i32, i32) {
    %c0_i32 = arith.constant 0 : i32
    %c0_i32_0 = arith.constant 0 : i32
    return %arg0, %c0_i32 : i32, i32
  }
}

module attributes {stable_mosaic.version = 11 : i64} {
  func.func @_attn_kernel_nomask(%arg0: i32, %arg1: memref<1x8x32xf32, #tpu.memory_space<vmem>>, %arg2: memref<1x8x32xf32, #tpu.memory_space<vmem>>, %arg3: memref<1x8x32xf32, #tpu.memory_space<vmem>>, %arg4: memref<1x8x32xf32, #tpu.memory_space<vmem>>) attributes {dimension_semantics = [#tpu.dimension_semantics<parallel>], iteration_bounds = array<i64: 2>, scalar_prefetch = 0 : i64, scratch_operands = 0 : i64, tpu.core_type = #tpu.core_type<tc>, window_params = [{transform_indices = @transform_0, window_bounds = array<i64: 1, 8, 32>}, {transform_indices = @transform_1, window_bounds = array<i64: 1, 8, 32>}, {transform_indices = @transform_2, window_bounds = array<i64: 1, 8, 32>}, {transform_indices = @transform_3, window_bounds = array<i64: 1, 8, 32>}]} {
    %c0 = arith.constant 0 : index
    %c0_0 = arith.constant 0 : index
    %c0_1 = arith.constant 0 : index
    %0 = vector.load %arg1[%c0, %c0_0, %c0_1] : memref<1x8x32xf32, #tpu.memory_space<vmem>>, vector<1x8x32xf32>
    %1 = vector.shape_cast %0 : vector<1x8x32xf32> to vector<8x32xf32>
    %c0_2 = arith.constant 0 : index
    %c0_3 = arith.constant 0 : index
    %c0_4 = arith.constant 0 : index
    %2 = vector.load %arg2[%c0_2, %c0_3, %c0_4] : memref<1x8x32xf32, #tpu.memory_space<vmem>>, vector<1x8x32xf32>
    %3 = vector.shape_cast %2 : vector<1x8x32xf32> to vector<8x32xf32>
    %c0_5 = arith.constant 0 : index
    %c0_6 = arith.constant 0 : index
    %c0_7 = arith.constant 0 : index
    %4 = vector.load %arg3[%c0_5, %c0_6, %c0_7] : memref<1x8x32xf32, #tpu.memory_space<vmem>>, vector<1x8x32xf32>
    %5 = vector.shape_cast %4 : vector<1x8x32xf32> to vector<8x32xf32>
    %6 = vector.extract_strided_slice %1 {offsets = [0, 0], sizes = [8, 8], strides = [1, 1]} : vector<8x32xf32> to vector<8x8xf32>
    %7 = arith.truncf %6 : vector<8x8xf32> to vector<8x8xbf16>
    %8 = vector.extract_strided_slice %3 {offsets = [0, 0], sizes = [8, 8], strides = [1, 1]} : vector<8x32xf32> to vector<8x8xf32>
    %9 = arith.truncf %8 : vector<8x8xf32> to vector<8x8xbf16>
    %10 = vector.extract_strided_slice %5 {offsets = [0, 0], sizes = [8, 8], strides = [1, 1]} : vector<8x32xf32> to vector<8x8xf32>
    %11 = arith.truncf %10 : vector<8x8xf32> to vector<8x8xbf16>
    %12 = tpu.transpose %9, [1, 0] : vector<8x8xbf16> -> vector<8x8xbf16>
    %cst = arith.constant dense<0.000000e+00> : vector<8x8xf32>
    %13 = tpu.matmul %7, %12, %cst {dimension_numbers = #tpu.dot_dimension_numbers<[1], [0], [0], [1], [0, 0, 1, 1], [], []>} : vector<8x8xbf16>, vector<8x8xbf16>, vector<8x8xf32> -> vector<8x8xf32>
    %cst_8 = arith.constant dense<0xFF800000> : vector<8xf32>
    %14 = vector.multi_reduction <maximumf>, %13, %cst_8 [1] : vector<8x8xf32> to vector<8xf32>
    %15 = vector.shape_cast %14 : vector<8xf32> to vector<8x1xf32>
    %16 = vector.broadcast %15 : vector<8x1xf32> to vector<8x8xf32>
    %17 = arith.subf %13, %16 : vector<8x8xf32>
    %18 = math.exp %17 : vector<8x8xf32>
    %cst_9 = arith.constant dense<0.000000e+00> : vector<8xf32>
    %19 = vector.multi_reduction <add>, %18, %cst_9 [1] : vector<8x8xf32> to vector<8xf32>
    %20 = vector.shape_cast %19 : vector<8xf32> to vector<8x1xf32>
    %21 = tpu.reciprocal %20 {approx = true} : vector<8x1xf32> -> vector<8x1xf32>
    %22 = vector.broadcast %21 : vector<8x1xf32> to vector<8x8xf32>
    %23 = arith.mulf %18, %22 : vector<8x8xf32>
    %24 = arith.truncf %23 : vector<8x8xf32> to vector<8x8xbf16>
    %cst_10 = arith.constant dense<0.000000e+00> : vector<8x8xf32>
    %25 = tpu.matmul %24, %11, %cst_10 {dimension_numbers = #tpu.dot_dimension_numbers<[1], [0], [0], [1], [0, 0, 1, 1], [], []>} : vector<8x8xbf16>, vector<8x8xbf16>, vector<8x8xf32> -> vector<8x8xf32>
    %26 = vector.extract_strided_slice %1 {offsets = [0, 8], sizes = [8, 8], strides = [1, 1]} : vector<8x32xf32> to vector<8x8xf32>
    %27 = arith.truncf %26 : vector<8x8xf32> to vector<8x8xbf16>
    %28 = vector.extract_strided_slice %3 {offsets = [0, 8], sizes = [8, 8], strides = [1, 1]} : vector<8x32xf32> to vector<8x8xf32>
    %29 = arith.truncf %28 : vector<8x8xf32> to vector<8x8xbf16>
    %30 = vector.extract_strided_slice %5 {offsets = [0, 8], sizes = [8, 8], strides = [1, 1]} : vector<8x32xf32> to vector<8x8xf32>
    %31 = arith.truncf %30 : vector<8x8xf32> to vector<8x8xbf16>
    %32 = tpu.transpose %29, [1, 0] : vector<8x8xbf16> -> vector<8x8xbf16>
    %cst_11 = arith.constant dense<0.000000e+00> : vector<8x8xf32>
    %33 = tpu.matmul %27, %32, %cst_11 {dimension_numbers = #tpu.dot_dimension_numbers<[1], [0], [0], [1], [0, 0, 1, 1], [], []>} : vector<8x8xbf16>, vector<8x8xbf16>, vector<8x8xf32> -> vector<8x8xf32>
    %cst_12 = arith.constant dense<0xFF800000> : vector<8xf32>
    %34 = vector.multi_reduction <maximumf>, %33, %cst_12 [1] : vector<8x8xf32> to vector<8xf32>
    %35 = vector.shape_cast %34 : vector<8xf32> to vector<8x1xf32>
    %36 = vector.broadcast %35 : vector<8x1xf32> to vector<8x8xf32>
    %37 = arith.subf %33, %36 : vector<8x8xf32>
    %38 = math.exp %37 : vector<8x8xf32>
    %cst_13 = arith.constant dense<0.000000e+00> : vector<8xf32>
    %39 = vector.multi_reduction <add>, %38, %cst_13 [1] : vector<8x8xf32> to vector<8xf32>
    %40 = vector.shape_cast %39 : vector<8xf32> to vector<8x1xf32>
    %41 = tpu.reciprocal %40 {approx = true} : vector<8x1xf32> -> vector<8x1xf32>
    %42 = vector.broadcast %41 : vector<8x1xf32> to vector<8x8xf32>
    %43 = arith.mulf %38, %42 : vector<8x8xf32>
    %44 = arith.truncf %43 : vector<8x8xf32> to vector<8x8xbf16>
    %cst_14 = arith.constant dense<0.000000e+00> : vector<8x8xf32>
    %45 = tpu.matmul %44, %31, %cst_14 {dimension_numbers = #tpu.dot_dimension_numbers<[1], [0], [0], [1], [0, 0, 1, 1], [], []>} : vector<8x8xbf16>, vector<8x8xbf16>, vector<8x8xf32> -> vector<8x8xf32>
    %46 = vector.extract_strided_slice %1 {offsets = [0, 16], sizes = [8, 8], strides = [1, 1]} : vector<8x32xf32> to vector<8x8xf32>
    %47 = arith.truncf %46 : vector<8x8xf32> to vector<8x8xbf16>
    %48 = vector.extract_strided_slice %3 {offsets = [0, 16], sizes = [8, 8], strides = [1, 1]} : vector<8x32xf32> to vector<8x8xf32>
    %49 = arith.truncf %48 : vector<8x8xf32> to vector<8x8xbf16>
    %50 = vector.extract_strided_slice %5 {offsets = [0, 16], sizes = [8, 8], strides = [1, 1]} : vector<8x32xf32> to vector<8x8xf32>
    %51 = arith.truncf %50 : vector<8x8xf32> to vector<8x8xbf16>
    %52 = tpu.transpose %49, [1, 0] : vector<8x8xbf16> -> vector<8x8xbf16>
    %cst_15 = arith.constant dense<0.000000e+00> : vector<8x8xf32>
    %53 = tpu.matmul %47, %52, %cst_15 {dimension_numbers = #tpu.dot_dimension_numbers<[1], [0], [0], [1], [0, 0, 1, 1], [], []>} : vector<8x8xbf16>, vector<8x8xbf16>, vector<8x8xf32> -> vector<8x8xf32>
    %cst_16 = arith.constant dense<0xFF800000> : vector<8xf32>
    %54 = vector.multi_reduction <maximumf>, %53, %cst_16 [1] : vector<8x8xf32> to vector<8xf32>
    %55 = vector.shape_cast %54 : vector<8xf32> to vector<8x1xf32>
    %56 = vector.broadcast %55 : vector<8x1xf32> to vector<8x8xf32>
    %57 = arith.subf %53, %56 : vector<8x8xf32>
    %58 = math.exp %57 : vector<8x8xf32>
    %cst_17 = arith.constant dense<0.000000e+00> : vector<8xf32>
    %59 = vector.multi_reduction <add>, %58, %cst_17 [1] : vector<8x8xf32> to vector<8xf32>
    %60 = vector.shape_cast %59 : vector<8xf32> to vector<8x1xf32>
    %61 = tpu.reciprocal %60 {approx = true} : vector<8x1xf32> -> vector<8x1xf32>
    %62 = vector.broadcast %61 : vector<8x1xf32> to vector<8x8xf32>
    %63 = arith.mulf %58, %62 : vector<8x8xf32>
    %64 = arith.truncf %63 : vector<8x8xf32> to vector<8x8xbf16>
    %cst_18 = arith.constant dense<0.000000e+00> : vector<8x8xf32>
    %65 = tpu.matmul %64, %51, %cst_18 {dimension_numbers = #tpu.dot_dimension_numbers<[1], [0], [0], [1], [0, 0, 1, 1], [], []>} : vector<8x8xbf16>, vector<8x8xbf16>, vector<8x8xf32> -> vector<8x8xf32>
    %66 = vector.extract_strided_slice %1 {offsets = [0, 24], sizes = [8, 8], strides = [1, 1]} : vector<8x32xf32> to vector<8x8xf32>
    %67 = arith.truncf %66 : vector<8x8xf32> to vector<8x8xbf16>
    %68 = vector.extract_strided_slice %3 {offsets = [0, 24], sizes = [8, 8], strides = [1, 1]} : vector<8x32xf32> to vector<8x8xf32>
    %69 = arith.truncf %68 : vector<8x8xf32> to vector<8x8xbf16>
    %70 = vector.extract_strided_slice %5 {offsets = [0, 24], sizes = [8, 8], strides = [1, 1]} : vector<8x32xf32> to vector<8x8xf32>
    %71 = arith.truncf %70 : vector<8x8xf32> to vector<8x8xbf16>
    %72 = tpu.transpose %69, [1, 0] : vector<8x8xbf16> -> vector<8x8xbf16>
    %cst_19 = arith.constant dense<0.000000e+00> : vector<8x8xf32>
    %73 = tpu.matmul %67, %72, %cst_19 {dimension_numbers = #tpu.dot_dimension_numbers<[1], [0], [0], [1], [0, 0, 1, 1], [], []>} : vector<8x8xbf16>, vector<8x8xbf16>, vector<8x8xf32> -> vector<8x8xf32>
    %cst_20 = arith.constant dense<0xFF800000> : vector<8xf32>
    %74 = vector.multi_reduction <maximumf>, %73, %cst_20 [1] : vector<8x8xf32> to vector<8xf32>
    %75 = vector.shape_cast %74 : vector<8xf32> to vector<8x1xf32>
    %76 = vector.broadcast %75 : vector<8x1xf32> to vector<8x8xf32>
    %77 = arith.subf %73, %76 : vector<8x8xf32>
    %78 = math.exp %77 : vector<8x8xf32>
    %cst_21 = arith.constant dense<0.000000e+00> : vector<8xf32>
    %79 = vector.multi_reduction <add>, %78, %cst_21 [1] : vector<8x8xf32> to vector<8xf32>
    %80 = vector.shape_cast %79 : vector<8xf32> to vector<8x1xf32>
    %81 = tpu.reciprocal %80 {approx = true} : vector<8x1xf32> -> vector<8x1xf32>
    %82 = vector.broadcast %81 : vector<8x1xf32> to vector<8x8xf32>
    %83 = arith.mulf %78, %82 : vector<8x8xf32>
    %84 = arith.truncf %83 : vector<8x8xf32> to vector<8x8xbf16>
    %cst_22 = arith.constant dense<0.000000e+00> : vector<8x8xf32>
    %85 = tpu.matmul %84, %71, %cst_22 {dimension_numbers = #tpu.dot_dimension_numbers<[1], [0], [0], [1], [0, 0, 1, 1], [], []>} : vector<8x8xbf16>, vector<8x8xbf16>, vector<8x8xf32> -> vector<8x8xf32>
    %86 = tpu.concatenate %25, %45, %65, %85 in 1 : vector<8x8xf32>, vector<8x8xf32>, vector<8x8xf32>, vector<8x8xf32> -> vector<8x32xf32>
    %c0_23 = arith.constant 0 : index
    %c0_24 = arith.constant 0 : index
    %c0_25 = arith.constant 0 : index
    %87 = vector.load %arg4[%c0_23, %c0_24, %c0_25] : memref<1x8x32xf32, #tpu.memory_space<vmem>>, vector<1x8x32xf32>
    %88 = vector.shape_cast %87 : vector<1x8x32xf32> to vector<8x32xf32>
    %89 = vector.shape_cast %86 : vector<8x32xf32> to vector<1x8x32xf32>
    tpu.vector_store %arg4[%c0_23, %c0_24, %c0_25], %89 {strides = array<i32>} : memref<1x8x32xf32, #tpu.memory_space<vmem>>, vector<1x8x32xf32>,
    return
  }
  func.func @transform_0(%arg0: i32) -> (i32, i32, i32) {
    %c0_i32 = arith.constant 0 : i32
    %c0_i32_0 = arith.constant 0 : i32
    %c0_i32_1 = arith.constant 0 : i32
    return %arg0, %c0_i32, %c0_i32_0 : i32, i32, i32
  }
  func.func @transform_1(%arg0: i32) -> (i32, i32, i32) {
    %c0_i32 = arith.constant 0 : i32
    %c0_i32_0 = arith.constant 0 : i32
    %c0_i32_1 = arith.constant 0 : i32
    return %arg0, %c0_i32, %c0_i32_0 : i32, i32, i32
  }
  func.func @transform_2(%arg0: i32) -> (i32, i32, i32) {
    %c0_i32 = arith.constant 0 : i32
    %c0_i32_0 = arith.constant 0 : i32
    %c0_i32_1 = arith.constant 0 : i32
    return %arg0, %c0_i32, %c0_i32_0 : i32, i32, i32
  }
  func.func @transform_3(%arg0: i32) -> (i32, i32, i32) {
    %c0_i32 = arith.constant 0 : i32
    %c0_i32_0 = arith.constant 0 : i32
    %c0_i32_1 = arith.constant 0 : i32
    return %arg0, %c0_i32, %c0_i32_0 : i32, i32, i32
  }
}

module attributes {stable_mosaic.version = 11 : i64} {
  func.func @_linear_kernel(%arg0: i32, %arg1: memref<32x32xf32, #tpu.memory_space<vmem>>, %arg2: memref<32x32xbf16, #tpu.memory_space<vmem>>, %arg3: memref<1x32xf32, #tpu.memory_space<vmem>>, %arg4: memref<32x32xf32, #tpu.memory_space<vmem>>) attributes {dimension_semantics = [#tpu.dimension_semantics<parallel>], iteration_bounds = array<i64: 1>, scalar_prefetch = 0 : i64, scratch_operands = 0 : i64, tpu.core_type = #tpu.core_type<tc>, window_params = [{transform_indices = @transform_0, window_bounds = array<i64: 32, 32>}, {pipeline_mode = #tpu.pipeline_mode<synchronous>, transform_indices = @transform_1, window_bounds = array<i64: 32, 32>}, {pipeline_mode = #tpu.pipeline_mode<synchronous>, transform_indices = @transform_2, window_bounds = array<i64: 1, 32>}, {transform_indices = @transform_3, window_bounds = array<i64: 32, 32>}]} {
    %c0 = arith.constant 0 : index
    %c0_0 = arith.constant 0 : index
    %0 = vector.load %arg1[%c0, %c0_0] : memref<32x32xf32, #tpu.memory_space<vmem>>, vector<32x32xf32>
    %1 = arith.truncf %0 : vector<32x32xf32> to vector<32x32xbf16>
    %c0_1 = arith.constant 0 : index
    %c0_2 = arith.constant 0 : index
    %2 = vector.load %arg2[%c0_1, %c0_2] : memref<32x32xbf16, #tpu.memory_space<vmem>>, vector<32x32xbf16>
    %cst = arith.constant dense<0.000000e+00> : vector<32x32xf32>
    %3 = tpu.matmul %1, %2, %cst {dimension_numbers = #tpu.dot_dimension_numbers<[1], [0], [0], [1], [0, 0, 1, 1], [], []>} : vector<32x32xbf16>, vector<32x32xbf16>, vector<32x32xf32> -> vector<32x32xf32>
    %c0_3 = arith.constant 0 : index
    %c0_4 = arith.constant 0 : index
    %4 = vector.load %arg3[%c0_3, %c0_4] : memref<1x32xf32, #tpu.memory_space<vmem>>, vector<1x32xf32>
    %5 = vector.broadcast %4 : vector<1x32xf32> to vector<32x32xf32>
    %6 = arith.addf %3, %5 : vector<32x32xf32>
    %c0_5 = arith.constant 0 : index
    %c0_6 = arith.constant 0 : index
    %7 = vector.load %arg4[%c0_5, %c0_6] : memref<32x32xf32, #tpu.memory_space<vmem>>, vector<32x32xf32>
    tpu.vector_store %arg4[%c0_5, %c0_6], %6 {strides = array<i32>} : memref<32x32xf32, #tpu.memory_space<vmem>>, vector<32x32xf32>,
    return
  }
  func.func @transform_0(%arg0: i32) -> (i32, i32) {
    %c0_i32 = arith.constant 0 : i32
    %c0_i32_0 = arith.constant 0 : i32
    return %arg0, %c0_i32 : i32, i32
  }
  func.func @transform_1(%arg0: i32) -> (i32, i32) {
    %c0_i32 = arith.constant 0 : i32
    %c0_i32_0 = arith.constant 0 : i32
    %c0_i32_1 = arith.constant 0 : i32
    return %c0_i32, %c0_i32_0 : i32, i32
  }
  func.func @transform_2(%arg0: i32) -> (i32, i32) {
    %c0_i32 = arith.constant 0 : i32
    %c0_i32_0 = arith.constant 0 : i32
    %c0_i32_1 = arith.constant 0 : i32
    return %c0_i32, %c0_i32_0 : i32, i32
  }
  func.func @transform_3(%arg0: i32) -> (i32, i32) {
    %c0_i32 = arith.constant 0 : i32
    %c0_i32_0 = arith.constant 0 : i32
    return %arg0, %c0_i32 : i32, i32
  }
}

module attributes {stable_mosaic.version = 11 : i64} {
  func.func @_ffn_res_ln_kernel(%arg0: i32, %arg1: memref<16x32xf32, #tpu.memory_space<vmem>>, %arg2: memref<32x64xbf16, #tpu.memory_space<vmem>>, %arg3: memref<1x64xf32, #tpu.memory_space<vmem>>, %arg4: memref<64x32xbf16, #tpu.memory_space<vmem>>, %arg5: memref<1x32xf32, #tpu.memory_space<vmem>>, %arg6: memref<1x32xf32, #tpu.memory_space<vmem>>, %arg7: memref<1x32xf32, #tpu.memory_space<vmem>>, %arg8: memref<16x32xf32, #tpu.memory_space<vmem>>) attributes {dimension_semantics = [#tpu.dimension_semantics<parallel>], iteration_bounds = array<i64: 1>, scalar_prefetch = 0 : i64, scratch_operands = 0 : i64, tpu.core_type = #tpu.core_type<tc>, window_params = [{transform_indices = @transform_0, window_bounds = array<i64: 16, 32>}, {pipeline_mode = #tpu.pipeline_mode<synchronous>, transform_indices = @transform_1, window_bounds = array<i64: 32, 64>}, {pipeline_mode = #tpu.pipeline_mode<synchronous>, transform_indices = @transform_2, window_bounds = array<i64: 1, 64>}, {pipeline_mode = #tpu.pipeline_mode<synchronous>, transform_indices = @transform_3, window_bounds = array<i64: 64, 32>}, {pipeline_mode = #tpu.pipeline_mode<synchronous>, transform_indices = @transform_4, window_bounds = array<i64: 1, 32>}, {pipeline_mode = #tpu.pipeline_mode<synchronous>, transform_indices = @transform_5, window_bounds = array<i64: 1, 32>}, {pipeline_mode = #tpu.pipeline_mode<synchronous>, transform_indices = @transform_6, window_bounds = array<i64: 1, 32>}, {transform_indices = @transform_7, window_bounds = array<i64: 16, 32>}]} {
    %c0 = arith.constant 0 : index
    %c0_0 = arith.constant 0 : index
    %0 = vector.load %arg1[%c0, %c0_0] : memref<16x32xf32, #tpu.memory_space<vmem>>, vector<16x32xf32>
    %1 = arith.truncf %0 : vector<16x32xf32> to vector<16x32xbf16>
    %c0_1 = arith.constant 0 : index
    %c0_2 = arith.constant 0 : index
    %2 = vector.load %arg2[%c0_1, %c0_2] : memref<32x64xbf16, #tpu.memory_space<vmem>>, vector<32x64xbf16>
    %cst = arith.constant dense<0.000000e+00> : vector<16x64xf32>
    %3 = tpu.matmul %1, %2, %cst {dimension_numbers = #tpu.dot_dimension_numbers<[1], [0], [0], [1], [0, 0, 1, 1], [], []>} : vector<16x32xbf16>, vector<32x64xbf16>, vector<16x64xf32> -> vector<16x64xf32>
    %c0_3 = arith.constant 0 : index
    %c0_4 = arith.constant 0 : index
    %4 = vector.load %arg3[%c0_3, %c0_4] : memref<1x64xf32, #tpu.memory_space<vmem>>, vector<1x64xf32>
    %5 = vector.broadcast %4 : vector<1x64xf32> to vector<16x64xf32>
    %6 = arith.addf %3, %5 : vector<16x64xf32>
    %cst_5 = arith.constant 0.000000e+00 : f32
    %7 = vector.broadcast %cst_5 : f32 to vector<16x64xf32>
    %8 = arith.maximumf %6, %7 : vector<16x64xf32>
    %9 = arith.truncf %8 : vector<16x64xf32> to vector<16x64xbf16>
    %c0_6 = arith.constant 0 : index
    %c0_7 = arith.constant 0 : index
    %10 = vector.load %arg4[%c0_6, %c0_7] : memref<64x32xbf16, #tpu.memory_space<vmem>>, vector<64x32xbf16>
    %cst_8 = arith.constant dense<0.000000e+00> : vector<16x32xf32>
    %11 = tpu.matmul %9, %10, %cst_8 {dimension_numbers = #tpu.dot_dimension_numbers<[1], [0], [0], [1], [0, 0, 1, 1], [], []>} : vector<16x64xbf16>, vector<64x32xbf16>, vector<16x32xf32> -> vector<16x32xf32>
    %c0_9 = arith.constant 0 : index
    %c0_10 = arith.constant 0 : index
    %12 = vector.load %arg5[%c0_9, %c0_10] : memref<1x32xf32, #tpu.memory_space<vmem>>, vector<1x32xf32>
    %13 = vector.broadcast %12 : vector<1x32xf32> to vector<16x32xf32>
    %14 = arith.addf %11, %13 : vector<16x32xf32>
    %15 = arith.addf %0, %14 : vector<16x32xf32>
    %cst_11 = arith.constant dense<0.000000e+00> : vector<16xf32>
    %16 = vector.multi_reduction <add>, %15, %cst_11 [1] : vector<16x32xf32> to vector<16xf32>
    %17 = vector.shape_cast %16 : vector<16xf32> to vector<16x1xf32>
    %cst_12 = arith.constant 3.200000e+01 : f32
    %18 = vector.broadcast %cst_12 : f32 to vector<16x1xf32>
    %19 = arith.divf %17, %18 : vector<16x1xf32>
    %20 = vector.broadcast %19 : vector<16x1xf32> to vector<16x32xf32>
    %21 = arith.subf %15, %20 : vector<16x32xf32>
    %22 = arith.mulf %21, %21 : vector<16x32xf32>
    %cst_13 = arith.constant dense<0.000000e+00> : vector<16xf32>
    %23 = vector.multi_reduction <add>, %22, %cst_13 [1] : vector<16x32xf32> to vector<16xf32>
    %24 = vector.shape_cast %23 : vector<16xf32> to vector<16x1xf32>
    %cst_14 = arith.constant 3.200000e+01 : f32
    %25 = vector.broadcast %cst_14 : f32 to vector<16x1xf32>
    %26 = arith.divf %24, %25 : vector<16x1xf32>
    %27 = vector.broadcast %19 : vector<16x1xf32> to vector<16x32xf32>
    %28 = arith.subf %15, %27 : vector<16x32xf32>
    %cst_15 = arith.constant 9.99999974E-6 : f32
    %29 = vector.broadcast %cst_15 : f32 to vector<16x1xf32>
    %30 = arith.addf %26, %29 : vector<16x1xf32>
    %31 = math.rsqrt %30 : vector<16x1xf32>
    %32 = vector.broadcast %31 : vector<16x1xf32> to vector<16x32xf32>
    %33 = arith.mulf %28, %32 : vector<16x32xf32>
    %c0_16 = arith.constant 0 : index
    %c0_17 = arith.constant 0 : index
    %34 = vector.load %arg6[%c0_16, %c0_17] : memref<1x32xf32, #tpu.memory_space<vmem>>, vector<1x32xf32>
    %35 = vector.broadcast %34 : vector<1x32xf32> to vector<16x32xf32>
    %36 = arith.mulf %33, %35 : vector<16x32xf32>
    %c0_18 = arith.constant 0 : index
    %c0_19 = arith.constant 0 : index
    %37 = vector.load %arg7[%c0_18, %c0_19] : memref<1x32xf32, #tpu.memory_space<vmem>>, vector<1x32xf32>
    %38 = vector.broadcast %37 : vector<1x32xf32> to vector<16x32xf32>
    %39 = arith.addf %36, %38 : vector<16x32xf32>
    %c0_20 = arith.constant 0 : index
    %c0_21 = arith.constant 0 : index
    %40 = vector.load %arg8[%c0_20, %c0_21] : memref<16x32xf32, #tpu.memory_space<vmem>>, vector<16x32xf32>
    tpu.vector_store %arg8[%c0_20, %c0_21], %39 {strides = array<i32>} : memref<16x32xf32, #tpu.memory_space<vmem>>, vector<16x32xf32>,
    return
  }
  func.func @transform_0(%arg0: i32) -> (i32, i32) {
    %c0_i32 = arith.constant 0 : i32
    %c0_i32_0 = arith.constant 0 : i32
    return %arg0, %c0_i32 : i32, i32
  }
  func.func @transform_1(%arg0: i32) -> (i32, i32) {
    %c0_i32 = arith.constant 0 : i32
    %c0_i32_0 = arith.constant 0 : i32
    %c0_i32_1 = arith.constant 0 : i32
    return %c0_i32, %c0_i32_0 : i32, i32
  }
  func.func @transform_2(%arg0: i32) -> (i32, i32) {
    %c0_i32 = arith.constant 0 : i32
    %c0_i32_0 = arith.constant 0 : i32
    %c0_i32_1 = arith.constant 0 : i32
    return %c0_i32, %c0_i32_0 : i32, i32
  }
  func.func @transform_3(%arg0: i32) -> (i32, i32) {
    %c0_i32 = arith.constant 0 : i32
    %c0_i32_0 = arith.constant 0 : i32
    %c0_i32_1 = arith.constant 0 : i32
    return %c0_i32, %c0_i32_0 : i32, i32
  }
  func.func @transform_4(%arg0: i32) -> (i32, i32) {
    %c0_i32 = arith.constant 0 : i32
    %c0_i32_0 = arith.constant 0 : i32
    %c0_i32_1 = arith.constant 0 : i32
    return %c0_i32, %c0_i32_0 : i32, i32
  }
  func.func @transform_5(%arg0: i32) -> (i32, i32) {
    %c0_i32 = arith.constant 0 : i32
    %c0_i32_0 = arith.constant 0 : i32
    %c0_i32_1 = arith.constant 0 : i32
    return %c0_i32, %c0_i32_0 : i32, i32
  }
  func.func @transform_6(%arg0: i32) -> (i32, i32) {
    %c0_i32 = arith.constant 0 : i32
    %c0_i32_0 = arith.constant 0 : i32
    %c0_i32_1 = arith.constant 0 : i32
    return %c0_i32, %c0_i32_0 : i32, i32
  }
  func.func @transform_7(%arg0: i32) -> (i32, i32) {
    %c0_i32 = arith.constant 0 : i32
    %c0_i32_0 = arith.constant 0 : i32
    return %arg0, %c0_i32 : i32, i32
  }
}

module attributes {stable_mosaic.version = 11 : i64} {
  func.func @_attn_kernel_mask(%arg0: i32, %arg1: memref<1x8x32xf32, #tpu.memory_space<vmem>>, %arg2: memref<1x16x32xf32, #tpu.memory_space<vmem>>, %arg3: memref<1x16x32xf32, #tpu.memory_space<vmem>>, %arg4: memref<1x1x16xf32, #tpu.memory_space<vmem>>, %arg5: memref<1x8x32xf32, #tpu.memory_space<vmem>>) attributes {dimension_semantics = [#tpu.dimension_semantics<parallel>], iteration_bounds = array<i64: 2>, scalar_prefetch = 0 : i64, scratch_operands = 0 : i64, tpu.core_type = #tpu.core_type<tc>, window_params = [{transform_indices = @transform_0, window_bounds = array<i64: 1, 8, 32>}, {transform_indices = @transform_1, window_bounds = array<i64: 1, 16, 32>}, {transform_indices = @transform_2, window_bounds = array<i64: 1, 16, 32>}, {transform_indices = @transform_3, window_bounds = array<i64: 1, 1, 16>}, {transform_indices = @transform_4, window_bounds = array<i64: 1, 8, 32>}]} {
    %c0 = arith.constant 0 : index
    %c0_0 = arith.constant 0 : index
    %c0_1 = arith.constant 0 : index
    %0 = vector.load %arg1[%c0, %c0_0, %c0_1] : memref<1x8x32xf32, #tpu.memory_space<vmem>>, vector<1x8x32xf32>
    %1 = vector.shape_cast %0 : vector<1x8x32xf32> to vector<8x32xf32>
    %c0_2 = arith.constant 0 : index
    %c0_3 = arith.constant 0 : index
    %c0_4 = arith.constant 0 : index
    %2 = vector.load %arg2[%c0_2, %c0_3, %c0_4] : memref<1x16x32xf32, #tpu.memory_space<vmem>>, vector<1x16x32xf32>
    %3 = vector.shape_cast %2 : vector<1x16x32xf32> to vector<16x32xf32>
    %c0_5 = arith.constant 0 : index
    %c0_6 = arith.constant 0 : index
    %c0_7 = arith.constant 0 : index
    %4 = vector.load %arg3[%c0_5, %c0_6, %c0_7] : memref<1x16x32xf32, #tpu.memory_space<vmem>>, vector<1x16x32xf32>
    %5 = vector.shape_cast %4 : vector<1x16x32xf32> to vector<16x32xf32>
    %c0_8 = arith.constant 0 : index
    %c0_9 = arith.constant 0 : index
    %c0_10 = arith.constant 0 : index
    %6 = vector.load %arg4[%c0_8, %c0_9, %c0_10] : memref<1x1x16xf32, #tpu.memory_space<vmem>>, vector<1x1x16xf32>
    %7 = vector.shape_cast %6 : vector<1x1x16xf32> to vector<1x16xf32>
    %8 = vector.extract_strided_slice %1 {offsets = [0, 0], sizes = [8, 8], strides = [1, 1]} : vector<8x32xf32> to vector<8x8xf32>
    %9 = arith.truncf %8 : vector<8x8xf32> to vector<8x8xbf16>
    %10 = vector.extract_strided_slice %3 {offsets = [0, 0], sizes = [16, 8], strides = [1, 1]} : vector<16x32xf32> to vector<16x8xf32>
    %11 = arith.truncf %10 : vector<16x8xf32> to vector<16x8xbf16>
    %12 = vector.extract_strided_slice %5 {offsets = [0, 0], sizes = [16, 8], strides = [1, 1]} : vector<16x32xf32> to vector<16x8xf32>
    %13 = arith.truncf %12 : vector<16x8xf32> to vector<16x8xbf16>
    %14 = tpu.transpose %11, [1, 0] : vector<16x8xbf16> -> vector<8x16xbf16>
    %cst = arith.constant dense<0.000000e+00> : vector<8x16xf32>
    %15 = tpu.matmul %9, %14, %cst {dimension_numbers = #tpu.dot_dimension_numbers<[1], [0], [0], [1], [0, 0, 1, 1], [], []>} : vector<8x8xbf16>, vector<8x16xbf16>, vector<8x16xf32> -> vector<8x16xf32>
    %16 = vector.broadcast %7 : vector<1x16xf32> to vector<8x16xf32>
    %17 = arith.addf %15, %16 : vector<8x16xf32>
    %cst_11 = arith.constant dense<0xFF800000> : vector<8xf32>
    %18 = vector.multi_reduction <maximumf>, %17, %cst_11 [1] : vector<8x16xf32> to vector<8xf32>
    %19 = vector.shape_cast %18 : vector<8xf32> to vector<8x1xf32>
    %20 = vector.broadcast %19 : vector<8x1xf32> to vector<8x16xf32>
    %21 = arith.subf %17, %20 : vector<8x16xf32>
    %22 = math.exp %21 : vector<8x16xf32>
    %cst_12 = arith.constant dense<0.000000e+00> : vector<8xf32>
    %23 = vector.multi_reduction <add>, %22, %cst_12 [1] : vector<8x16xf32> to vector<8xf32>
    %24 = vector.shape_cast %23 : vector<8xf32> to vector<8x1xf32>
    %25 = tpu.reciprocal %24 {approx = true} : vector<8x1xf32> -> vector<8x1xf32>
    %26 = vector.broadcast %25 : vector<8x1xf32> to vector<8x16xf32>
    %27 = arith.mulf %22, %26 : vector<8x16xf32>
    %28 = arith.truncf %27 : vector<8x16xf32> to vector<8x16xbf16>
    %cst_13 = arith.constant dense<0.000000e+00> : vector<8x8xf32>
    %29 = tpu.matmul %28, %13, %cst_13 {dimension_numbers = #tpu.dot_dimension_numbers<[1], [0], [0], [1], [0, 0, 1, 1], [], []>} : vector<8x16xbf16>, vector<16x8xbf16>, vector<8x8xf32> -> vector<8x8xf32>
    %30 = vector.extract_strided_slice %1 {offsets = [0, 8], sizes = [8, 8], strides = [1, 1]} : vector<8x32xf32> to vector<8x8xf32>
    %31 = arith.truncf %30 : vector<8x8xf32> to vector<8x8xbf16>
    %32 = vector.extract_strided_slice %3 {offsets = [0, 8], sizes = [16, 8], strides = [1, 1]} : vector<16x32xf32> to vector<16x8xf32>
    %33 = arith.truncf %32 : vector<16x8xf32> to vector<16x8xbf16>
    %34 = vector.extract_strided_slice %5 {offsets = [0, 8], sizes = [16, 8], strides = [1, 1]} : vector<16x32xf32> to vector<16x8xf32>
    %35 = arith.truncf %34 : vector<16x8xf32> to vector<16x8xbf16>
    %36 = tpu.transpose %33, [1, 0] : vector<16x8xbf16> -> vector<8x16xbf16>
    %cst_14 = arith.constant dense<0.000000e+00> : vector<8x16xf32>
    %37 = tpu.matmul %31, %36, %cst_14 {dimension_numbers = #tpu.dot_dimension_numbers<[1], [0], [0], [1], [0, 0, 1, 1], [], []>} : vector<8x8xbf16>, vector<8x16xbf16>, vector<8x16xf32> -> vector<8x16xf32>
    %38 = vector.broadcast %7 : vector<1x16xf32> to vector<8x16xf32>
    %39 = arith.addf %37, %38 : vector<8x16xf32>
    %cst_15 = arith.constant dense<0xFF800000> : vector<8xf32>
    %40 = vector.multi_reduction <maximumf>, %39, %cst_15 [1] : vector<8x16xf32> to vector<8xf32>
    %41 = vector.shape_cast %40 : vector<8xf32> to vector<8x1xf32>
    %42 = vector.broadcast %41 : vector<8x1xf32> to vector<8x16xf32>
    %43 = arith.subf %39, %42 : vector<8x16xf32>
    %44 = math.exp %43 : vector<8x16xf32>
    %cst_16 = arith.constant dense<0.000000e+00> : vector<8xf32>
    %45 = vector.multi_reduction <add>, %44, %cst_16 [1] : vector<8x16xf32> to vector<8xf32>
    %46 = vector.shape_cast %45 : vector<8xf32> to vector<8x1xf32>
    %47 = tpu.reciprocal %46 {approx = true} : vector<8x1xf32> -> vector<8x1xf32>
    %48 = vector.broadcast %47 : vector<8x1xf32> to vector<8x16xf32>
    %49 = arith.mulf %44, %48 : vector<8x16xf32>
    %50 = arith.truncf %49 : vector<8x16xf32> to vector<8x16xbf16>
    %cst_17 = arith.constant dense<0.000000e+00> : vector<8x8xf32>
    %51 = tpu.matmul %50, %35, %cst_17 {dimension_numbers = #tpu.dot_dimension_numbers<[1], [0], [0], [1], [0, 0, 1, 1], [], []>} : vector<8x16xbf16>, vector<16x8xbf16>, vector<8x8xf32> -> vector<8x8xf32>
    %52 = vector.extract_strided_slice %1 {offsets = [0, 16], sizes = [8, 8], strides = [1, 1]} : vector<8x32xf32> to vector<8x8xf32>
    %53 = arith.truncf %52 : vector<8x8xf32> to vector<8x8xbf16>
    %54 = vector.extract_strided_slice %3 {offsets = [0, 16], sizes = [16, 8], strides = [1, 1]} : vector<16x32xf32> to vector<16x8xf32>
    %55 = arith.truncf %54 : vector<16x8xf32> to vector<16x8xbf16>
    %56 = vector.extract_strided_slice %5 {offsets = [0, 16], sizes = [16, 8], strides = [1, 1]} : vector<16x32xf32> to vector<16x8xf32>
    %57 = arith.truncf %56 : vector<16x8xf32> to vector<16x8xbf16>
    %58 = tpu.transpose %55, [1, 0] : vector<16x8xbf16> -> vector<8x16xbf16>
    %cst_18 = arith.constant dense<0.000000e+00> : vector<8x16xf32>
    %59 = tpu.matmul %53, %58, %cst_18 {dimension_numbers = #tpu.dot_dimension_numbers<[1], [0], [0], [1], [0, 0, 1, 1], [], []>} : vector<8x8xbf16>, vector<8x16xbf16>, vector<8x16xf32> -> vector<8x16xf32>
    %60 = vector.broadcast %7 : vector<1x16xf32> to vector<8x16xf32>
    %61 = arith.addf %59, %60 : vector<8x16xf32>
    %cst_19 = arith.constant dense<0xFF800000> : vector<8xf32>
    %62 = vector.multi_reduction <maximumf>, %61, %cst_19 [1] : vector<8x16xf32> to vector<8xf32>
    %63 = vector.shape_cast %62 : vector<8xf32> to vector<8x1xf32>
    %64 = vector.broadcast %63 : vector<8x1xf32> to vector<8x16xf32>
    %65 = arith.subf %61, %64 : vector<8x16xf32>
    %66 = math.exp %65 : vector<8x16xf32>
    %cst_20 = arith.constant dense<0.000000e+00> : vector<8xf32>
    %67 = vector.multi_reduction <add>, %66, %cst_20 [1] : vector<8x16xf32> to vector<8xf32>
    %68 = vector.shape_cast %67 : vector<8xf32> to vector<8x1xf32>
    %69 = tpu.reciprocal %68 {approx = true} : vector<8x1xf32> -> vector<8x1xf32>
    %70 = vector.broadcast %69 : vector<8x1xf32> to vector<8x16xf32>
    %71 = arith.mulf %66, %70 : vector<8x16xf32>
    %72 = arith.truncf %71 : vector<8x16xf32> to vector<8x16xbf16>
    %cst_21 = arith.constant dense<0.000000e+00> : vector<8x8xf32>
    %73 = tpu.matmul %72, %57, %cst_21 {dimension_numbers = #tpu.dot_dimension_numbers<[1], [0], [0], [1], [0, 0, 1, 1], [], []>} : vector<8x16xbf16>, vector<16x8xbf16>, vector<8x8xf32> -> vector<8x8xf32>
    %74 = vector.extract_strided_slice %1 {offsets = [0, 24], sizes = [8, 8], strides = [1, 1]} : vector<8x32xf32> to vector<8x8xf32>
    %75 = arith.truncf %74 : vector<8x8xf32> to vector<8x8xbf16>
    %76 = vector.extract_strided_slice %3 {offsets = [0, 24], sizes = [16, 8], strides = [1, 1]} : vector<16x32xf32> to vector<16x8xf32>
    %77 = arith.truncf %76 : vector<16x8xf32> to vector<16x8xbf16>
    %78 = vector.extract_strided_slice %5 {offsets = [0, 24], sizes = [16, 8], strides = [1, 1]} : vector<16x32xf32> to vector<16x8xf32>
    %79 = arith.truncf %78 : vector<16x8xf32> to vector<16x8xbf16>
    %80 = tpu.transpose %77, [1, 0] : vector<16x8xbf16> -> vector<8x16xbf16>
    %cst_22 = arith.constant dense<0.000000e+00> : vector<8x16xf32>
    %81 = tpu.matmul %75, %80, %cst_22 {dimension_numbers = #tpu.dot_dimension_numbers<[1], [0], [0], [1], [0, 0, 1, 1], [], []>} : vector<8x8xbf16>, vector<8x16xbf16>, vector<8x16xf32> -> vector<8x16xf32>
    %82 = vector.broadcast %7 : vector<1x16xf32> to vector<8x16xf32>
    %83 = arith.addf %81, %82 : vector<8x16xf32>
    %cst_23 = arith.constant dense<0xFF800000> : vector<8xf32>
    %84 = vector.multi_reduction <maximumf>, %83, %cst_23 [1] : vector<8x16xf32> to vector<8xf32>
    %85 = vector.shape_cast %84 : vector<8xf32> to vector<8x1xf32>
    %86 = vector.broadcast %85 : vector<8x1xf32> to vector<8x16xf32>
    %87 = arith.subf %83, %86 : vector<8x16xf32>
    %88 = math.exp %87 : vector<8x16xf32>
    %cst_24 = arith.constant dense<0.000000e+00> : vector<8xf32>
    %89 = vector.multi_reduction <add>, %88, %cst_24 [1] : vector<8x16xf32> to vector<8xf32>
    %90 = vector.shape_cast %89 : vector<8xf32> to vector<8x1xf32>
    %91 = tpu.reciprocal %90 {approx = true} : vector<8x1xf32> -> vector<8x1xf32>
    %92 = vector.broadcast %91 : vector<8x1xf32> to vector<8x16xf32>
    %93 = arith.mulf %88, %92 : vector<8x16xf32>
    %94 = arith.truncf %93 : vector<8x16xf32> to vector<8x16xbf16>
    %cst_25 = arith.constant dense<0.000000e+00> : vector<8x8xf32>
    %95 = tpu.matmul %94, %79, %cst_25 {dimension_numbers = #tpu.dot_dimension_numbers<[1], [0], [0], [1], [0, 0, 1, 1], [], []>} : vector<8x16xbf16>, vector<16x8xbf16>, vector<8x8xf32> -> vector<8x8xf32>
    %96 = tpu.concatenate %29, %51, %73, %95 in 1 : vector<8x8xf32>, vector<8x8xf32>, vector<8x8xf32>, vector<8x8xf32> -> vector<8x32xf32>
    %c0_26 = arith.constant 0 : index
    %c0_27 = arith.constant 0 : index
    %c0_28 = arith.constant 0 : index
    %97 = vector.load %arg5[%c0_26, %c0_27, %c0_28] : memref<1x8x32xf32, #tpu.memory_space<vmem>>, vector<1x8x32xf32>
    %98 = vector.shape_cast %97 : vector<1x8x32xf32> to vector<8x32xf32>
    %99 = vector.shape_cast %96 : vector<8x32xf32> to vector<1x8x32xf32>
    tpu.vector_store %arg5[%c0_26, %c0_27, %c0_28], %99 {strides = array<i32>} : memref<1x8x32xf32, #tpu.memory_space<vmem>>, vector<1x8x32xf32>,
    return
  }
  func.func @transform_0(%arg0: i32) -> (i32, i32, i32) {
    %c0_i32 = arith.constant 0 : i32
    %c0_i32_0 = arith.constant 0 : i32
    %c0_i32_1 = arith.constant 0 : i32
    return %arg0, %c0_i32, %c0_i32_0 : i32, i32, i32
  }
  func.func @transform_1(%arg0: i32) -> (i32, i32, i32) {
    %c0_i32 = arith.constant 0 : i32
    %c0_i32_0 = arith.constant 0 : i32
    %c0_i32_1 = arith.constant 0 : i32
    return %arg0, %c0_i32, %c0_i32_0 : i32, i32, i32
  }
  func.func @transform_2(%arg0: i32) -> (i32, i32, i32) {
    %c0_i32 = arith.constant 0 : i32
    %c0_i32_0 = arith.constant 0 : i32
    %c0_i32_1 = arith.constant 0 : i32
    return %arg0, %c0_i32, %c0_i32_0 : i32, i32, i32
  }
  func.func @transform_3(%arg0: i32) -> (i32, i32, i32) {
    %c0_i32 = arith.constant 0 : i32
    %c0_i32_0 = arith.constant 0 : i32
    %c0_i32_1 = arith.constant 0 : i32
    return %arg0, %c0_i32, %c0_i32_0 : i32, i32, i32
  }
  func.func @transform_4(%arg0: i32) -> (i32, i32, i32) {
    %c0_i32 = arith.constant 0 : i32
    %c0_i32_0 = arith.constant 0 : i32
    %c0_i32_1 = arith.constant 0 : i32
    return %arg0, %c0_i32, %c0_i32_0 : i32, i32, i32
  }
}

module attributes {stable_mosaic.version = 11 : i64} {
  func.func @_ln_kernel(%arg0: i32, %arg1: memref<16x32xf32, #tpu.memory_space<vmem>>, %arg2: memref<1x32xf32, #tpu.memory_space<vmem>>, %arg3: memref<1x32xf32, #tpu.memory_space<vmem>>, %arg4: memref<16x32xf32, #tpu.memory_space<vmem>>) attributes {dimension_semantics = [#tpu.dimension_semantics<parallel>], iteration_bounds = array<i64: 1>, scalar_prefetch = 0 : i64, scratch_operands = 0 : i64, tpu.core_type = #tpu.core_type<tc>, window_params = [{transform_indices = @transform_0, window_bounds = array<i64: 16, 32>}, {pipeline_mode = #tpu.pipeline_mode<synchronous>, transform_indices = @transform_1, window_bounds = array<i64: 1, 32>}, {pipeline_mode = #tpu.pipeline_mode<synchronous>, transform_indices = @transform_2, window_bounds = array<i64: 1, 32>}, {transform_indices = @transform_3, window_bounds = array<i64: 16, 32>}]} {
    %c0 = arith.constant 0 : index
    %c0_0 = arith.constant 0 : index
    %0 = vector.load %arg1[%c0, %c0_0] : memref<16x32xf32, #tpu.memory_space<vmem>>, vector<16x32xf32>
    %cst = arith.constant dense<0.000000e+00> : vector<16xf32>
    %1 = vector.multi_reduction <add>, %0, %cst [1] : vector<16x32xf32> to vector<16xf32>
    %2 = vector.shape_cast %1 : vector<16xf32> to vector<16x1xf32>
    %cst_1 = arith.constant 3.200000e+01 : f32
    %3 = vector.broadcast %cst_1 : f32 to vector<16x1xf32>
    %4 = arith.divf %2, %3 : vector<16x1xf32>
    %5 = vector.broadcast %4 : vector<16x1xf32> to vector<16x32xf32>
    %6 = arith.subf %0, %5 : vector<16x32xf32>
    %7 = arith.mulf %6, %6 : vector<16x32xf32>
    %cst_2 = arith.constant dense<0.000000e+00> : vector<16xf32>
    %8 = vector.multi_reduction <add>, %7, %cst_2 [1] : vector<16x32xf32> to vector<16xf32>
    %9 = vector.shape_cast %8 : vector<16xf32> to vector<16x1xf32>
    %cst_3 = arith.constant 3.200000e+01 : f32
    %10 = vector.broadcast %cst_3 : f32 to vector<16x1xf32>
    %11 = arith.divf %9, %10 : vector<16x1xf32>
    %12 = vector.broadcast %4 : vector<16x1xf32> to vector<16x32xf32>
    %13 = arith.subf %0, %12 : vector<16x32xf32>
    %cst_4 = arith.constant 9.99999974E-6 : f32
    %14 = vector.broadcast %cst_4 : f32 to vector<16x1xf32>
    %15 = arith.addf %11, %14 : vector<16x1xf32>
    %16 = math.rsqrt %15 : vector<16x1xf32>
    %17 = vector.broadcast %16 : vector<16x1xf32> to vector<16x32xf32>
    %18 = arith.mulf %13, %17 : vector<16x32xf32>
    %c0_5 = arith.constant 0 : index
    %c0_6 = arith.constant 0 : index
    %19 = vector.load %arg2[%c0_5, %c0_6] : memref<1x32xf32, #tpu.memory_space<vmem>>, vector<1x32xf32>
    %20 = vector.broadcast %19 : vector<1x32xf32> to vector<16x32xf32>
    %21 = arith.mulf %18, %20 : vector<16x32xf32>
    %c0_7 = arith.constant 0 : index
    %c0_8 = arith.constant 0 : index
    %22 = vector.load %arg3[%c0_7, %c0_8] : memref<1x32xf32, #tpu.memory_space<vmem>>, vector<1x32xf32>
    %23 = vector.broadcast %22 : vector<1x32xf32> to vector<16x32xf32>
    %24 = arith.addf %21, %23 : vector<16x32xf32>
    %c0_9 = arith.constant 0 : index
    %c0_10 = arith.constant 0 : index
    %25 = vector.load %arg4[%c0_9, %c0_10] : memref<16x32xf32, #tpu.memory_space<vmem>>, vector<16x32xf32>
    tpu.vector_store %arg4[%c0_9, %c0_10], %24 {strides = array<i32>} : memref<16x32xf32, #tpu.memory_space<vmem>>, vector<16x32xf32>,
    return
  }
  func.func @transform_0(%arg0: i32) -> (i32, i32) {
    %c0_i32 = arith.constant 0 : i32
    %c0_i32_0 = arith.constant 0 : i32
    return %arg0, %c0_i32 : i32, i32
  }
  func.func @transform_1(%arg0: i32) -> (i32, i32) {
    %c0_i32 = arith.constant 0 : i32
    %c0_i32_0 = arith.constant 0 : i32
    %c0_i32_1 = arith.constant 0 : i32
    return %c0_i32, %c0_i32_0 : i32, i32
  }
  func.func @transform_2(%arg0: i32) -> (i32, i32) {
    %c0_i32 = arith.constant 0 : i32
    %c0_i32_0 = arith.constant 0 : i32
    %c0_i32_1 = arith.constant 0 : i32
    return %c0_i32, %c0_i32_0 : i32, i32
  }
  func.func @transform_3(%arg0: i32) -> (i32, i32) {
    %c0_i32 = arith.constant 0 : i32
    %c0_i32_0 = arith.constant 0 : i32
    return %arg0, %c0_i32 : i32, i32
  }
}

</mosaic_0001>

<bundles_post_ra>
// kernel: transformer_decoder_forward.26
= control target key start
LH: loop header
LB: loop body
LE: loop exit
PB: predicated region body
PF: predicated region fallthrough
CT: control target
= control target key end

     0   :  { %v112_v0 = vmov 0.0   ;;  %vm113_vm0 = vmmov 0   ;;  %vm41_vm1 = vcmask 261120   ;;  %vm86_vm2 = vcmask 523264   ;;  %s155_s1 = inlined_call_operand.vmem [shape: bf16[32,64], index: 1, kind: input, shape index: {}]   ;;  %s156_s0 = inlined_call_operand.vmem [shape: f32[16,32], index: 0, kind: input, shape index: {}]   ;;  %s157_s2 = inlined_call_operand.vmem [shape: f32[1,64], index: 2, kind: input, shape index: {}]   ;;  %s158_s3 = inlined_call_operand.vmem [shape: f32[16,64], index: 3, kind: output, shape index: {}]  }
   0x1   :  { %100 = vmatprep.subr.bf16.mxu0 %v112_v0  ;;  %v110_v1 = vld [vmem:[%s155_s1] sm:$0xff]   ;;  %104 = vmatprep.mubr.msk.bf16.mxu0 %vm113_vm0, %v112_v0  ;;  %v111_v2 = vld [vmem:[%s155_s1 + $0x8] sm:$0xff]  }
   0x2   :  { %101 = vmatpush3.bf16.msra.mxu0 %v110_v1  ;;  %v15_v3 = vld [vmem:[%s156_s0] sm:$0xff]  ;;  %v16_v4 = vld [vmem:[%s156_s0 + $0x8] sm:$0xff] }
   0x3   :  { %102 = vmatprep.subr.bf16.mxu0 %v112_v0  ;;  %v17_v5 = vpack.c.bf16 %v16_v4, %v15_v3  ;;  %v93_v6 = vld [vmem:[%s157_s2] ss:$0 sm:$0xff] }
   0x6   :  { %103 = vmatpush3.bf16.msra.mxu0 %v111_v2 }
   0x9   :  { %105 = vmatmul.mubr.msk.bf16.vlgmr.msra.gmra.mrb[0].mxu0 %vm41_vm1, %v17_v5 }
  0xdc   :  { %v79_v7 = vpop.f32.mrb[0].mxu0 }
  0xdd   :  { %v80_v8 = vadd.f32 %v93_v6, %v79_v7  ;;  %v106_v9 = vpop.f32.mrb[1].mxu0 }
  0xde   :  { %v82_v10 = vpop.f32.mrb[2].mxu0 }
  0xdf   :  { %87 = vst.msk [vmem:[%s158_s3] sm:$0xff] %vm86_vm2, %v80_v8  ;;  %v83_v11 = vadd.f32 %v93_v6, %v82_v10  ;;  %v107_v12 = vpop.f32.mrb[3].mxu0 }
  0xe1   :  { %88 = vst.msk [vmem:[%s158_s3 + $0x8] sm:$0xff] %vm86_vm2, %v83_v11 }

// kernel: transformer_decoder_forward.30
= control target key start
LH: loop header
LB: loop body
LE: loop exit
PB: predicated region body
PF: predicated region fallthrough
CT: control target
= control target key end

     0   :  { %vm23_vm0 = vcmask 261120   ;;  %s136_s0 = inlined_call_operand.vmem [shape: f32[16,32], index: 0, kind: input, shape index: {}]   ;;  %s137_s1 = inlined_call_operand.vmem [shape: f32[16,32], index: 1, kind: input, shape index: {}]   ;;  %s138_s2 = inlined_call_operand.vmem [shape: f32[1,32], index: 2, kind: input, shape index: {}]   ;;  %s139_s3 = inlined_call_operand.vmem [shape: f32[1,32], index: 3, kind: input, shape index: {}]   ;;  %s140_s4 = inlined_call_operand.vmem [shape: f32[16,32], index: 4, kind: output, shape index: {}]  }
   0x1   :  { %v17_v0 = vld [vmem:[%s136_s0] sm:$0xff]  ;;  %v18_v2 = vld [vmem:[%s136_s0 + $0x8] sm:$0xff] }
   0x2   :  { %v19_v1 = vld [vmem:[%s137_s1] sm:$0xff]  ;;  %v20_v4 = vld [vmem:[%s137_s1 + $0x8] sm:$0xff] }
   0x3   :  { %v21_v3 = vadd.f32 %v19_v1, %v17_v0  ;;  %v22_v5 = vadd.f32 %v20_v4, %v18_v2  ;;  %v75_v25 = vld [vmem:[%s138_s2] ss:$0 sm:$0xff] }
   0x4   :  { %v76_v27 = vld [vmem:[%s139_s3] ss:$0 sm:$0xff] }
   0x5   :  { %v24_v6 = vsel %vm23_vm0, %v21_v3, 0.0  ;;  %v27_v7 = vsel %vm23_vm0, %v22_v5, 0.0 }
   0x6   :  { %25 = vadd.xlane.f32.xlu0 %v24_v6 }
   0xa   :  { %28 = vadd.xlane.f32.xlu0 %v27_v7 }
  0x93   :  { %v26_v8 = vpop.xlane.xlu0 %25 }
  0x94   :  { %v31_v9 = vmul.f32 0.03125, %v26_v8 }
  0x96   :  { %v33_v10 = vsub.f32 %v21_v3, %v31_v9 }
  0x97   :  { %v29_v11 = vpop.xlane.xlu0 %28 }
  0x98   :  { %v32_v12 = vmul.f32 0.03125, %v29_v11  ;;  %v35_v13 = vmul.f32 %v33_v10, %v33_v10 }
  0x9a   :  { %v34_v14 = vsub.f32 %v22_v5, %v32_v12  ;;  %v37_v15 = vsel %vm23_vm0, %v35_v13, 0.0 }
  0x9b   :  { %38 = vadd.xlane.f32.xlu1 %v37_v15 }
  0x9c   :  { %v36_v16 = vmul.f32 %v34_v14, %v34_v14 }
  0x9e   :  { %v40_v17 = vsel %vm23_vm0, %v36_v16, 0.0 }
  0x9f   :  { %41 = vadd.xlane.f32.xlu1 %v40_v17 }
 0x128   :  { %v39_v18 = vpop.xlane.xlu1 %38 }
 0x129   :  { %v43_v19 = vmul.f32 0.03125, %v39_v18 }
 0x12b   :  { %v45_v20 = vadd.f32 1e-05, %v43_v19 }
 0x12c   :  { %v42_v21 = vpop.xlane.xlu1 %41 }
 0x12d   :  { %77 = vrsqrt.f32 %v45_v20  ;;  %v44_v22 = vmul.f32 0.03125, %v42_v21 }
 0x12f   :  { %v46_v23 = vadd.f32 1e-05, %v44_v22 }
 0x131   :  { %79 = vrsqrt.f32 %v46_v23 }
 0x137   :  { %v78_v24 = vpop.eup %77 }
 0x138   :  { %v49_v26 = vmul.f32 %v78_v24, %v33_v10 }
 0x13a   :  { %v58_v28 = vmul.f32 %v75_v25, %v49_v26 }
 0x13b   :  { %v80_v29 = vpop.eup %79 }
 0x13c   :  { %v67_v30 = vadd.f32 %v76_v27, %v58_v28  ;;  %v50_v31 = vmul.f32 %v80_v29, %v34_v14 }
 0x13e   :  { %69 = vst.msk [vmem:[%s140_s4] sm:$0xff] %vm23_vm0, %v67_v30  ;;  %v59_v32 = vmul.f32 %v75_v25, %v50_v31 }
 0x140   :  { %v68_v33 = vadd.f32 %v76_v27, %v59_v32 }
 0x142   :  { %70 = vst.msk [vmem:[%s140_s4 + $0x8] sm:$0xff] %vm23_vm0, %v68_v33 }

// kernel: transformer_decoder_forward.27
= control target key start
LH: loop header
LB: loop body
LE: loop exit
PB: predicated region body
PF: predicated region fallthrough
CT: control target
= control target key end

     0   :  { %v111_v0 = vmov 0.0   ;;  %vm112_vm0 = vmmov 0   ;;  %vm41_vm1 = vcmask 261120   ;;  %s154_s1 = inlined_call_operand.vmem [shape: bf16[32,32], index: 1, kind: input, shape index: {}]   ;;  %s155_s0 = inlined_call_operand.vmem [shape: f32[16,32], index: 0, kind: input, shape index: {}]   ;;  %s156_s2 = inlined_call_operand.vmem [shape: f32[1,32], index: 2, kind: input, shape index: {}]   ;;  %s157_s3 = inlined_call_operand.vmem [shape: f32[16,32], index: 3, kind: output, shape index: {}]  }
   0x1   :  { %99 = vmatprep.subr.bf16.mxu0 %v111_v0  ;;  %v109_v1 = vld [vmem:[%s154_s1] sm:$0xff]   ;;  %103 = vmatprep.mubr.msk.bf16.mxu0 %vm112_vm0, %v111_v0  ;;  %v110_v2 = vld [vmem:[%s154_s1 + $0x8] sm:$0xff]  }
   0x2   :  { %100 = vmatpush3.bf16.msra.mxu0 %v109_v1  ;;  %v15_v3 = vld [vmem:[%s155_s0] sm:$0xff]  ;;  %v16_v4 = vld [vmem:[%s155_s0 + $0x8] sm:$0xff] }
   0x3   :  { %101 = vmatprep.subr.bf16.mxu0 %v111_v0  ;;  %v17_v5 = vpack.c.bf16 %v16_v4, %v15_v3  ;;  %v92_v6 = vld [vmem:[%s156_s2] ss:$0 sm:$0xff] }
   0x6   :  { %102 = vmatpush3.bf16.msra.mxu0 %v110_v2 }
   0x9   :  { %104 = vmatmul.mubr.msk.bf16.vlgmr.msra.gmra.mrb[0].mxu0 %vm41_vm1, %v17_v5 }
  0xdc   :  { %v79_v7 = vpop.f32.mrb[0].mxu0 }
  0xdd   :  { %v80_v8 = vadd.f32 %v92_v6, %v79_v7  ;;  %v105_v9 = vpop.f32.mrb[1].mxu0 }
  0xde   :  { %v82_v10 = vpop.f32.mrb[2].mxu0 }
  0xdf   :  { %86 = vst.msk [vmem:[%s157_s3] sm:$0xff] %vm41_vm1, %v80_v8  ;;  %v83_v11 = vadd.f32 %v92_v6, %v82_v10  ;;  %v106_v12 = vpop.f32.mrb[3].mxu0 }
  0xe1   :  { %87 = vst.msk [vmem:[%s157_s3 + $0x8] sm:$0xff] %vm41_vm1, %v83_v11 }

// kernel: transformer_decoder_forward.28
= control target key start
LH: loop header
LB: loop body
LE: loop exit
PB: predicated region body
PF: predicated region fallthrough
CT: control target
= control target key end

     0   :  { %s893_s12 = smov 0   ;;  %s989_s0 = inlined_call_operand.vmem [shape: f32[2,8,32], index: 0, kind: input, shape index: {}]   ;;  %s990_s1 = inlined_call_operand.vmem [shape: f32[2,8,32], index: 1, kind: input, shape index: {}]   ;;  %s991_s2 = inlined_call_operand.vmem [shape: f32[2,8,32], index: 2, kind: input, shape index: {}]   ;;  %s992_s3 = inlined_call_operand.vmem [shape: f32[2,8,32], index: 3, kind: output, shape index: {}]  }
   0x1 LB: > { %s742_s13 = sadd.s32 4294967295, %s863_s12   ;;  %p746_p0 = scmp.ge.s32.totalorder %s863_s12, 1  ;;  %s863_s12 = sphi %s893_s12, %s13_s12  }
   0x2   : > { %p154_p1 = scmp.lt.s32.totalorder %s863_s12, 3 }
   0x4   : > { %p155_p2 = pnand %p746_p0, %p154_p1 }
   0x5   : > { %p184_p3 = scmp.lt.s32.totalorder (!%p155_p2), %s742_s13, 1  ;;  %v865_v0 = vmov (!%p155_p2), 0.0   ;;  %vm866_vm0 = vmmov (!%p155_p2), 0   ;;  %vm207_vm1 = vcmask (!%p155_p2), 64512   ;;  %s867_s21 = smov (!%p155_p2), 120   ;;  %vm269_vm2 = vcmask (!%p155_p2), 1043456  }
   0x6   : > { %158 = sbr.rel (%p155_p2) target bundleno = 1473 (0x5c1), region = 32  ;;  %777 = vmatprep.subr.bf16.mxu0 (!%p155_p2), %v865_v0  ;;  %779 = vmatprep.mubr.msk.bf16.mxu0 (!%p155_p2), %vm866_vm0, %v865_v0  ;;  %s868_s22 = smov (!%p155_p2), 112   ;;  %vm659_vm3 = vcmask (!%p155_p2), 130048   ;;  %vm661_vm4 = vcmask (!%p155_p2), 195584   ;;  %vm663_vm5 = vcmask (!%p155_p2), 261120  }
   0x7   : > { %783 = vmatprep.subr.bf16.mxu1 (!%p155_p2), %v865_v0  ;;  %785 = vmatprep.mubr.msk.bf16.mxu1 (!%p155_p2), %vm866_vm0, %v865_v0  ;;  %s869_s23 = smov (!%p155_p2), 104   ;;  %s870_s27 = smov (!%p155_p2), 8  }
   0x8   : > { %s871_s28 = smov (!%p155_p2), 16   ;;  %s872_s29 = smov (!%p155_p2), 24  }
   0xd   : > { %s994_s13 = smov (!%p184_p3, %s742_s13), 1 }
   0xe   : > { %s907_s14 = sshll.u32 %s994_s13, 3 }
   0xf   : > { %s191_s17 = scalar_lea.vmem %s990_s1, %s907_s14  ;;  %s187_s20 = scalar_lea.vmem %s989_s0, %s907_s14 }
  0x10   : > { %v202_v1 = vld [vmem:[%s191_s17] sm:$0xff]  ;;  %s195_s26 = scalar_lea.vmem %s991_s2, %s907_s14  ;;  %s199_s5 = scalar_lea.vmem %s992_s3, %s907_s14 }
  0x11   : > { %v205_v2 = vpack.c.bf16 %v202_v1, %v202_v1  ;;  %v201_v4 = vld [vmem:[%s187_s20] sm:$0xff] }
  0x12   : > { %v204_v5 = vpack.c.bf16 %v201_v4, %v201_v4  ;;  %v203_v16 = vld [vmem:[%s195_s26] sm:$0xff] }
  0x13   : > { %v212_v3 = vsel %vm207_vm1, %v205_v2, 0  ;;  %317 = vrot.lane.b32.xlu1 %v205_v2, %s867_s21  ;;  %v933_v17 = vpack.c.bf16 %v203_v16, %v203_v16 }
  0x14   : > { %778 = vmatpush3.bf16.xpose.msra.mxu0 %v212_v3 }
  0x15   : > { %795 = vmatprep.subr.bf16.mxu0 %v865_v0  ;;  %v271_v18 = vsel %vm269_vm2, %v933_v17, 0 }
  0x16   : > { %784 = vmatpush3.bf16.msra.mxu1 %v271_v18 }
  0x17   : > { %314 = vrot.lane.b32.xlu1 %v204_v5, %s867_s21  ;;  %789 = vmatprep.subr.bf16.mxu1 %v865_v0 }
  0x1b   : > { %780 = vmatmul.mubr.msk.bf16.vlgmr.msra.gmra.mrb[0].mxu0 %vm207_vm1, %v204_v5  ;;  %426 = vrot.lane.b32.xlu1 %v204_v5, %s868_s22 }
  0x1c   : > { %797 = vmatprep.mubr.msk.bf16.mxu0 %vm866_vm0, %v865_v0 }
  0x1f   : > { %538 = vrot.lane.b32.xlu1 %v205_v2, %s869_s23 }
  0x23   : > { %536 = vrot.lane.b32.xlu1 %v204_v5, %s869_s23 }
  0x85   : > { %v318_v21 = vpop.permute.xlu1 %317 }
  0x86   : > { %v323_v23 = vsel %vm207_vm1, %v318_v21, 0 }
  0x89   : > { %v315_v25 = vpop.permute.xlu1 %314 }
  0x8d   : > { %v427_v27 = vpop.permute.xlu1 %426 }
  0x91   : > { %v539_v29 = vpop.permute.xlu1 %538 }
  0x92   : > { %v544_v30 = vsel %vm207_vm1, %v539_v29, 0 }
  0x95   : > { %v537_v31 = vpop.permute.xlu1 %536 }
  0xee   : > { %v248_v6 = vpop.f32.mrb[0].mxu0 }
  0xef   : > { %v781_v7 = vpop.f32.mrb[1].mxu0  ;;  %v254_v8 = vsel %vm207_vm1, %v248_v6, -inf }
  0xf0   : > { %255 = vmax.xlane.f32.xlu0 %v254_v8  ;;  %v251_v9 = vpop.f32.mrb[2].mxu0 }
  0xf1   : > { %v782_v10 = vpop.f32.mrb[3].mxu0 }
 0x17d   : > { %v256_v11 = vpop.xlane.xlu0 %255 }
 0x17e   : > { %v257_v12 = vsub.f32 %v248_v6, %v256_v11 }
 0x180   : > { %v258_v13 = vmul.f32 1.442695, %v257_v12 }
 0x182   : > { %841 = vpow2.f32 %v258_v13 }
 0x18c   : > { %v842_v14 = vpop.eup %841 }
 0x18d   : > { %v260_v15 = vsel %vm207_vm1, %v842_v14, 0.0 }
 0x18e   : > { %261 = vadd.xlane.f32.xlu0 %v260_v15 }
 0x1a4   : > { %428 = vrot.lane.b32.xlu0 %v205_v2, %s868_s22 }
 0x21b   : > { %v262_v19 = vpop.xlane.xlu0 %261 }
 0x21c   : > { %843 = vrcp.f32 %v262_v19 }
 0x21f   : > { %v429_v26 = vpop.permute.xlu0 %428 }
 0x220   : > { %v434_v28 = vsel %vm207_vm1, %v429_v26, 0 }
 0x226   : > { %v844_v20 = vpop.eup %843 }
 0x227   : > { %v264_v22 = vmul.f32 %v844_v20, %v842_v14 }
 0x229   : > { %v265_v24 = vpack.c.bf16 %v264_v22, %v264_v22 }
 0x22b   : > { %786 = vmatmul.mubr.msk.bf16.vlgmr.msra.gmra.mrb[0].mxu1 %vm207_vm1, %v265_v24 }
 0x22c   : > { %790 = vmatpush3.bf16.xpose.msra.mxu1 %v323_v23  ;;  %791 = vmatprep.mubr.msk.bf16.mxu1 %vm866_vm0, %v865_v0 }
 0x22d   : > { %801 = vmatprep.subr.bf16.mxu1 %v865_v0 }
 0x233   : > { %792 = vmatmul.mubr.msk.bf16.vlgmr.msra.gmra.mrb[4].mxu1 %vm207_vm1, %v315_v25 }
 0x234   : > { %802 = vmatpush3.bf16.xpose.msra.mxu1 %v434_v28  ;;  %803 = vmatprep.mubr.msk.bf16.mxu1 %vm866_vm0, %v865_v0 }
 0x235   : > { %813 = vmatprep.subr.bf16.mxu1 %v865_v0 }
 0x23b   : > { %804 = vmatmul.mubr.msk.bf16.vlgmr.msra.gmra.mrb[8].mxu1 %vm207_vm1, %v427_v27 }
 0x23c   : > { %814 = vmatpush3.bf16.xpose.msra.mxu1 %v544_v30  ;;  %815 = vmatprep.mubr.msk.bf16.mxu1 %vm866_vm0, %v865_v0 }
 0x243   : > { %816 = vmatmul.mubr.msk.bf16.vlgmr.msra.gmra.mrb[12].mxu1 %vm207_vm1, %v537_v31 }
 0x2fe   : > { %v954_v32 = vpop.f32.mrb[0].mxu1 }
 0x2ff   : > { %v787_v33 = vpop.f32.mrb[1].mxu1 }
 0x300   : > { %v310_v34 = vpop.f32.mrb[2].mxu1 }
 0x301   : > { %v788_v35 = vpop.f32.mrb[3].mxu1 }
 0x306   : > { %v359_v36 = vpop.f32.mrb[4].mxu1 }
 0x307   : > { %v793_v37 = vpop.f32.mrb[5].mxu1  ;;  %v365_v38 = vsel %vm207_vm1, %v359_v36, -inf }
 0x308   : > { %366 = vmax.xlane.f32.xlu1 %v365_v38  ;;  %v362_v39 = vpop.f32.mrb[6].mxu1 }
 0x309   : > { %v794_v40 = vpop.f32.mrb[7].mxu1 }
 0x30e   : > { %v470_v41 = vpop.f32.mrb[8].mxu1 }
 0x30f   : > { %v476_v42 = vsel %vm207_vm1, %v470_v41, -inf  ;;  %v805_v43 = vpop.f32.mrb[9].mxu1 }
 0x310   : > { %477 = vmax.xlane.f32.xlu0 %v476_v42  ;;  %v473_v44 = vpop.f32.mrb[10].mxu1 }
 0x311   : > { %v806_v45 = vpop.f32.mrb[11].mxu1 }
 0x316   : > { %v580_v46 = vpop.f32.mrb[12].mxu1 }
 0x317   : > { %v586_v47 = vsel %vm207_vm1, %v580_v46, -inf  ;;  %v817_v48 = vpop.f32.mrb[13].mxu1 }
 0x318   : > { %587 = vmax.xlane.f32.xlu1 %v586_v47  ;;  %v583_v49 = vpop.f32.mrb[14].mxu1 }
 0x319   : > { %v818_v50 = vpop.f32.mrb[15].mxu1 }
 0x395   : > { %v367_v51 = vpop.xlane.xlu1 %366 }
 0x396   : > { %v368_v52 = vsub.f32 %v359_v36, %v367_v51 }
 0x398   : > { %v369_v53 = vmul.f32 1.442695, %v368_v52 }
 0x39a   : > { %845 = vpow2.f32 %v369_v53 }
 0x39d   : > { %v478_v54 = vpop.xlane.xlu0 %477 }
 0x39e   : > { %v479_v55 = vsub.f32 %v470_v41, %v478_v54 }
 0x3a0   : > { %v480_v56 = vmul.f32 1.442695, %v479_v55 }
 0x3a2   : > { %847 = vpow2.f32 %v480_v56 }
 0x3a4   : > { %v846_v57 = vpop.eup %845 }
 0x3a5   : > { %v371_v58 = vsel %vm207_vm1, %v846_v57, 0.0  ;;  %v588_v61 = vpop.xlane.xlu1 %587 }
 0x3a6   : > { %372 = vadd.xlane.f32.xlu1 %v371_v58  ;;  %v589_v62 = vsub.f32 %v580_v46, %v588_v61 }
 0x3a8   : > { %v590_v63 = vmul.f32 1.442695, %v589_v62 }
 0x3aa   : > { %849 = vpow2.f32 %v590_v63 }
 0x3ac   : > { %v848_v59 = vpop.eup %847 }
 0x3ad   : > { %v482_v60 = vsel %vm207_vm1, %v848_v59, 0.0 }
 0x3ae   : > { %483 = vadd.xlane.f32.xlu0 %v482_v60 }
 0x3b4   : > { %v850_v1 = vpop.eup %849 }
 0x3b5   : > { %v592_v2 = vsel %vm207_vm1, %v850_v1, 0.0 }
 0x3b7   : > { %488 = vrot.lane.b32.xlu1 %v933_v17, %s868_s22 }
 0x3c4   : > { %378 = vrot.lane.b32.xlu0 %v933_v17, %s867_s21 }
 0x3db   : > { %593 = vadd.xlane.f32.xlu1 %v592_v2 }
 0x3ec   : > { %598 = vrot.lane.b32.xlu1 %v933_v17, %s869_s23 }
 0x433   : > { %v373_v3 = vpop.xlane.xlu1 %372 }
 0x434   : > { %851 = vrcp.f32 %v373_v3 }
 0x437   : > { %v489_v9 = vpop.permute.xlu1 %488 }
 0x438   : > { %v494_v11 = vsel %vm269_vm2, %v489_v9, 0 }
 0x43b   : > { %v484_v4 = vpop.xlane.xlu0 %483 }
 0x43c   : > { %853 = vrcp.f32 %v484_v4 }
 0x43e   : > { %v852_v5 = vpop.eup %851 }
 0x43f   : > { %v375_v6 = vmul.f32 %v852_v5, %v846_v57  ;;  %v379_v7 = vpop.permute.xlu0 %378 }
 0x440   : > { %v384_v8 = vsel %vm269_vm2, %v379_v7, 0 }
 0x441   : > { %796 = vmatpush3.bf16.msra.mxu0 %v384_v8  ;;  %v376_v10 = vpack.c.bf16 %v375_v6, %v375_v6 }
 0x442   : > { %807 = vmatprep.subr.bf16.mxu0 %v865_v0 }
 0x444   : > { %798 = vmatmul.mubr.msk.bf16.vlgmr.msra.gmra.mrb[4].mxu0 %vm207_vm1, %v376_v10 }
 0x445   : > { %808 = vmatpush3.bf16.msra.mxu0 %v494_v11  ;;  %809 = vmatprep.mubr.msk.bf16.mxu0 %vm866_vm0, %v865_v0 }
 0x446   : > { %v854_v12 = vpop.eup %853  ;;  %819 = vmatprep.subr.bf16.mxu0 %v865_v0 }
 0x447   : > { %v486_v13 = vmul.f32 %v854_v12, %v848_v59 }
 0x449   : > { %v487_v14 = vpack.c.bf16 %v486_v13, %v486_v13 }
 0x44c   : > { %810 = vmatmul.mubr.msk.bf16.vlgmr.msra.gmra.mrb[8].mxu0 %vm207_vm1, %v487_v14 }
 0x44d   : > { %821 = vmatprep.mubr.msk.bf16.mxu0 %vm866_vm0, %v865_v0 }
 0x468   : > { %v594_v15 = vpop.xlane.xlu1 %593 }
 0x469   : > { %855 = vrcp.f32 %v594_v15 }
 0x46c   : > { %v599_v16 = vpop.permute.xlu1 %598 }
 0x46d   : > { %v604_v17 = vsel %vm269_vm2, %v599_v16, 0 }
 0x46e   : > { %820 = vmatpush3.bf16.msra.mxu0 %v604_v17 }
 0x473   : > { %v856_v18 = vpop.eup %855 }
 0x474   : > { %v596_v19 = vmul.f32 %v856_v18, %v850_v1 }
 0x476   : > { %v597_v20 = vpack.c.bf16 %v596_v19, %v596_v19 }
 0x478   : > { %822 = vmatmul.mubr.msk.bf16.vlgmr.msra.gmra.mrb[12].mxu0 %vm207_vm1, %v597_v20 }
 0x517   : > { %v420_v21 = vpop.f32.mrb[4].mxu0 }
 0x518   : > { %647 = vrot.lane.b32.xlu0 %v420_v21, %s870_s27  ;;  %v799_v22 = vpop.f32.mrb[5].mxu0 }
 0x519   : > { %v423_v23 = vpop.f32.mrb[6].mxu0 }
 0x51a   : > { %v800_v24 = vpop.f32.mrb[7].mxu0 }
 0x51f   : > { %v530_v25 = vpop.f32.mrb[8].mxu0 }
 0x520   : > { %651 = vrot.lane.b32.xlu1 %v530_v25, %s871_s28  ;;  %v811_v0 = vpop.f32.mrb[9].mxu0 }
 0x521   : > { %v533_v26 = vpop.f32.mrb[10].mxu0 }
 0x522   : > { %v812_v27 = vpop.f32.mrb[11].mxu0 }
 0x54b   : > { %v640_v28 = vpop.f32.mrb[12].mxu0 }
 0x54c   : > { %655 = vrot.lane.b32.xlu0 %v640_v28, %s872_s29  ;;  %v823_v29 = vpop.f32.mrb[13].mxu0 }
 0x54d   : > { %v643_v30 = vpop.f32.mrb[14].mxu0 }
 0x54e   : > { %v824_v31 = vpop.f32.mrb[15].mxu0 }
 0x58a   : > { %v648_v33 = vpop.permute.xlu0 %647 }
 0x58b   : > { %v658_v35 = vsel %vm207_vm1, %v954_v32, %v648_v33 }
 0x592   : > { %v652_v34 = vpop.permute.xlu1 %651 }
 0x593   : > { %v660_v36 = vsel %vm659_vm3, %v658_v35, %v652_v34 }
 0x5be   : > { %v656_v37 = vpop.permute.xlu0 %655 }
 0x5bf   : > { %v662_v38 = vsel %vm661_vm4, %v660_v36, %v656_v37 }
 0x5c0   : > { %664 = vst.msk [vmem:[%s199_s5] sm:$0xff] %vm663_vm5, %v662_v38 }
 0x5c1 PF: > { %s13_s12 = sadd.s32 1, %s863_s12  }
 0x5c2   : > { %p10_p4 = scmp.ge.s32.totalorder %s13_s12, 4  }
 0x5c4   :  { %12 = sbr.rel (!%p10_p4) target bundleno = 1 (0x1), region = 68 }

// kernel: transformer_decoder_forward.32
= control target key start
LH: loop header
LB: loop body
LE: loop exit
PB: predicated region body
PF: predicated region fallthrough
CT: control target
= control target key end

     0   :  { %vm44_vm0 = vcmask 261120   ;;  %s186_s1 = inlined_call_operand.vmem [shape: bf16[32,32], index: 1, kind: input, shape index: {}]   ;;  %s187_s0 = inlined_call_operand.vmem [shape: f32[32,32], index: 0, kind: input, shape index: {}]   ;;  %s188_s2 = inlined_call_operand.vmem [shape: f32[1,32], index: 2, kind: input, shape index: {}]   ;;  %s189_s3 = inlined_call_operand.vmem [shape: f32[32,32], index: 3, kind: output, shape index: {}]  }
   0x1   :  { %v125_v0 = vld [vmem:[%s186_s1] sm:$0xff]   ;;  %v126_v1 = vld [vmem:[%s186_s1 + $0x8] sm:$0xff]   ;;  %v17_v5 = vld [vmem:[%s187_s0 + $0x10] sm:$0xff] }
   0x2   :  { %117 = vmatprep.subr.bf16.mxu0 %v125_v0  ;;  %v15_v2 = vld [vmem:[%s187_s0] sm:$0xff]  ;;  %v16_v3 = vld [vmem:[%s187_s0 + $0x8] sm:$0xff]  ;;  %v18_v6 = vld [vmem:[%s187_s0 + $0x18] sm:$0xff] }
   0x3   :  { %118 = vmatpush3.bf16.msra.mxu0 %v125_v0  ;;  %v19_v4 = vpack.c.bf16 %v16_v3, %v15_v2  ;;  %v20_v7 = vpack.c.bf16 %v18_v6, %v17_v5  ;;  %v108_v8 = vld [vmem:[%s188_s2] ss:$0 sm:$0xff] }
   0x4   :  { %119 = vmatprep.subr.bf16.mxu0 %v126_v1 }
   0x5   :  { %121 = vmatprep.mubr.msk.bf16.mxu0 %vm44_vm0, %v19_v4 }
   0x7   :  { %120 = vmatpush3.bf16.msra.mxu0 %v126_v1 }
   0xa   :  { %122 = vmatmul.mubr.msk.bf16.vlgmr.msra.gmra.mrb[0].mxu0 %vm44_vm0, %v20_v7 }
  0xdd   :  { %v123_v9 = vpop.f32.mrb[0].mxu0 }
  0xde   :  { %v94_v10 = vadd.f32 %v123_v9, %v108_v8  ;;  %v85_v11 = vpop.f32.mrb[1].mxu0 }
  0xdf   :  { %v86_v12 = vadd.f32 %v108_v8, %v85_v11  ;;  %v124_v13 = vpop.f32.mrb[2].mxu0 }
  0xe0   :  { %102 = vst.msk [vmem:[%s189_s3 + $0x10] sm:$0xff] %vm44_vm0, %v94_v10  ;;  %v97_v14 = vadd.f32 %v124_v13, %v108_v8  ;;  %v88_v15 = vpop.f32.mrb[3].mxu0 }
  0xe1   :  { %100 = vst.msk [vmem:[%s189_s3] sm:$0xff] %vm44_vm0, %v86_v12  ;;  %v89_v16 = vadd.f32 %v108_v8, %v88_v15 }
  0xe2   :  { %103 = vst.msk [vmem:[%s189_s3 + $0x18] sm:$0xff] %vm44_vm0, %v97_v14 }
  0xe3   :  { %101 = vst.msk [vmem:[%s189_s3 + $0x8] sm:$0xff] %vm44_vm0, %v89_v16 }

// kernel: transformer_decoder_forward.37
= control target key start
LH: loop header
LB: loop body
LE: loop exit
PB: predicated region body
PF: predicated region fallthrough
CT: control target
= control target key end

     0   :  { %v290_v0 = vmov 0.0   ;;  %vm291_vm0 = vmmov 0   ;;  %vm53_vm1 = vcmask 261120   ;;  %vm140_vm2 = vcmask 523264   ;;  %s381_s1 = inlined_call_operand.vmem [shape: bf16[32,64], index: 1, kind: input, shape index: {}]   ;;  %s382_s0 = inlined_call_operand.vmem [shape: f32[16,32], index: 0, kind: input, shape index: {}]   ;;  %s383_s3 = inlined_call_operand.vmem [shape: bf16[64,32], index: 3, kind: input, shape index: {}]   ;;  %s384_s2 = inlined_call_operand.vmem [shape: f32[1,64], index: 2, kind: input, shape index: {}]   ;;  %s385_s4 = inlined_call_operand.vmem [shape: f32[1,32], index: 4, kind: input, shape index: {}]   ;;  %s386_s5 = inlined_call_operand.vmem [shape: f32[1,32], index: 5, kind: input, shape index: {}]   ;;  %s387_s6 = inlined_call_operand.vmem [shape: f32[1,32], index: 6, kind: input, shape index: {}]   ;;  %s388_s7 = inlined_call_operand.vmem [shape: f32[16,32], index: 7, kind: output, shape index: {}]  }
   0x1   :  { %258 = vmatprep.subr.bf16.mxu0 %v290_v0  ;;  %v280_v1 = vld [vmem:[%s381_s1] sm:$0xff]   ;;  %262 = vmatprep.mubr.msk.bf16.mxu0 %vm291_vm0, %v290_v0  ;;  %v281_v2 = vld [vmem:[%s381_s1 + $0x8] sm:$0xff]   ;;  %v284_v8 = vld [vmem:[%s383_s3 + $0x10] sm:$0xff]  }
   0x2   :  { %266 = vmatprep.subr.bf16.mxu1 %v290_v0  ;;  %274 = vmatprep.mubr.msk.bf16.mxu1 %vm291_vm0, %v290_v0  ;;  %v27_v3 = vld [vmem:[%s382_s0] sm:$0xff]  ;;  %v28_v4 = vld [vmem:[%s382_s0 + $0x8] sm:$0xff]  ;;  %v285_v9 = vld [vmem:[%s383_s3 + $0x18] sm:$0xff]  }
   0x3   :  { %259 = vmatpush3.bf16.msra.mxu0 %v280_v1  ;;  %v282_v5 = vld [vmem:[%s383_s3] sm:$0xff]   ;;  %v283_v6 = vld [vmem:[%s383_s3 + $0x8] sm:$0xff]   ;;  %v29_v7 = vpack.c.bf16 %v28_v4, %v27_v3 }
   0x4   :  { %260 = vmatprep.subr.bf16.mxu0 %v290_v0  ;;  %267 = vmatpush3.bf16.msra.mxu1 %v282_v5  ;;  %v238_v10 = vld [vmem:[%s384_s2] ss:$0 sm:$0xff] }
   0x5   :  { %268 = vmatprep.subr.bf16.mxu1 %v290_v0  ;;  %v242_v20 = vld [vmem:[%s385_s4] ss:$0 sm:$0xff] }
   0x6   :  { %v248_v48 = vld [vmem:[%s386_s5] ss:$0 sm:$0xff] }
   0x7   :  { %261 = vmatpush3.bf16.msra.mxu0 %v281_v2  ;;  %v249_v50 = vld [vmem:[%s387_s6] ss:$0 sm:$0xff] }
   0x8   :  { %269 = vmatpush3.bf16.msra.mxu1 %v283_v6 }
   0x9   :  { %270 = vmatprep.subr.bf16.mxu1 %v290_v0 }
   0xa   :  { %263 = vmatmul.mubr.msk.bf16.vlgmr.msra.gmra.mrb[0].mxu0 %vm53_vm1, %v29_v7 }
   0xc   :  { %271 = vmatpush3.bf16.msra.mxu1 %v284_v8 }
   0xd   :  { %272 = vmatprep.subr.bf16.mxu1 %v290_v0 }
  0x10   :  { %273 = vmatpush3.bf16.msra.mxu1 %v285_v9 }
  0xdd   :  { %v91_v11 = vpop.f32.mrb[0].mxu0 }
  0xde   :  { %v92_v12 = vadd.f32 %v238_v10, %v91_v11  ;;  %v264_v13 = vpop.f32.mrb[1].mxu0 }
  0xdf   :  { %v94_v14 = vpop.f32.mrb[2].mxu0 }
  0xe0   :  { %v95_v15 = vadd.f32 %v238_v10, %v94_v14  ;;  %v265_v16 = vpop.f32.mrb[3].mxu0  ;;  %v98_v17 = vmax.f32 %v92_v12, 0.0 }
  0xe2   :  { %v99_v18 = vmax.f32 %v95_v15, 0.0 }
  0xe4   :  { %v100_v19 = vpack.c.bf16 %v99_v18, %v98_v17 }
  0xe6   :  { %275 = vmatmul.mubr.msk.bf16.vlgmr.msra.gmra.mrb[0].mxu1 %vm140_vm2, %v100_v19 }
 0x1b9   :  { %v178_v21 = vpop.f32.mrb[0].mxu1 }
 0x1ba   :  { %v179_v22 = vadd.f32 %v242_v20, %v178_v21  ;;  %v276_v23 = vpop.f32.mrb[1].mxu1 }
 0x1bb   :  { %v181_v24 = vpop.f32.mrb[2].mxu1 }
 0x1bc   :  { %v182_v25 = vadd.f32 %v242_v20, %v181_v24  ;;  %v277_v26 = vpop.f32.mrb[3].mxu1  ;;  %v185_v27 = vadd.f32 %v179_v22, %v27_v3 }
 0x1be   :  { %v187_v28 = vsel %vm53_vm1, %v185_v27, 0.0  ;;  %v186_v29 = vadd.f32 %v182_v25, %v28_v4 }
 0x1bf   :  { %188 = vadd.xlane.f32.xlu0 %v187_v28 }
 0x1c0   :  { %v190_v30 = vsel %vm53_vm1, %v186_v29, 0.0 }
 0x1c3   :  { %191 = vadd.xlane.f32.xlu0 %v190_v30 }
 0x24c   :  { %v189_v31 = vpop.xlane.xlu0 %188 }
 0x24d   :  { %v194_v32 = vmul.f32 0.03125, %v189_v31 }
 0x24f   :  { %v196_v33 = vsub.f32 %v185_v27, %v194_v32 }
 0x250   :  { %v192_v34 = vpop.xlane.xlu0 %191 }
 0x251   :  { %v195_v35 = vmul.f32 0.03125, %v192_v34  ;;  %v198_v36 = vmul.f32 %v196_v33, %v196_v33 }
 0x253   :  { %v197_v37 = vsub.f32 %v186_v29, %v195_v35  ;;  %v200_v38 = vsel %vm53_vm1, %v198_v36, 0.0 }
 0x254   :  { %201 = vadd.xlane.f32.xlu1 %v200_v38 }
 0x255   :  { %v199_v39 = vmul.f32 %v197_v37, %v197_v37 }
 0x257   :  { %v203_v40 = vsel %vm53_vm1, %v199_v39, 0.0 }
 0x258   :  { %204 = vadd.xlane.f32.xlu1 %v203_v40 }
 0x2e1   :  { %v202_v41 = vpop.xlane.xlu1 %201 }
 0x2e2   :  { %v206_v42 = vmul.f32 0.03125, %v202_v41 }
 0x2e4   :  { %v208_v43 = vadd.f32 1e-05, %v206_v42 }
 0x2e5   :  { %v205_v44 = vpop.xlane.xlu1 %204 }
 0x2e6   :  { %286 = vrsqrt.f32 %v208_v43  ;;  %v207_v45 = vmul.f32 0.03125, %v205_v44 }
 0x2e8   :  { %v209_v46 = vadd.f32 1e-05, %v207_v45 }
 0x2ea   :  { %288 = vrsqrt.f32 %v209_v46 }
 0x2f0   :  { %v287_v47 = vpop.eup %286 }
 0x2f1   :  { %v212_v49 = vmul.f32 %v287_v47, %v196_v33 }
 0x2f3   :  { %v221_v51 = vmul.f32 %v248_v48, %v212_v49 }
 0x2f4   :  { %v289_v52 = vpop.eup %288 }
 0x2f5   :  { %v230_v53 = vadd.f32 %v249_v50, %v221_v51  ;;  %v213_v54 = vmul.f32 %v289_v52, %v197_v37 }
 0x2f7   :  { %232 = vst.msk [vmem:[%s388_s7] sm:$0xff] %vm53_vm1, %v230_v53  ;;  %v222_v55 = vmul.f32 %v248_v48, %v213_v54 }
 0x2f9   :  { %v231_v56 = vadd.f32 %v249_v50, %v222_v55 }
 0x2fb   :  { %233 = vst.msk [vmem:[%s388_s7 + $0x8] sm:$0xff] %vm53_vm1, %v231_v56 }

// kernel: transformer_decoder_forward.51
= control target key start
LH: loop header
LB: loop body
LE: loop exit
PB: predicated region body
PF: predicated region fallthrough
CT: control target
= control target key end

     0   :  { %vm16_vm0 = vcmask 261120   ;;  %s118_s0 = inlined_call_operand.vmem [shape: f32[16,32], index: 0, kind: input, shape index: {}]   ;;  %s119_s1 = inlined_call_operand.vmem [shape: f32[1,32], index: 1, kind: input, shape index: {}]   ;;  %s120_s2 = inlined_call_operand.vmem [shape: f32[1,32], index: 2, kind: input, shape index: {}]   ;;  %s121_s3 = inlined_call_operand.vmem [shape: f32[16,32], index: 3, kind: output, shape index: {}]  }
   0x1   :  { %v14_v0 = vld [vmem:[%s118_s0] sm:$0xff]  ;;  %v15_v1 = vld [vmem:[%s118_s0 + $0x8] sm:$0xff] }
   0x2   :  { %v17_v2 = vsel %vm16_vm0, %v14_v0, 0.0  ;;  %v20_v3 = vsel %vm16_vm0, %v15_v1, 0.0  ;;  %v68_v21 = vld [vmem:[%s119_s1] ss:$0 sm:$0xff] }
   0x3   :  { %18 = vadd.xlane.f32.xlu0 %v17_v2  ;;  %v69_v23 = vld [vmem:[%s120_s2] ss:$0 sm:$0xff] }
   0x7   :  { %21 = vadd.xlane.f32.xlu0 %v20_v3 }
  0x90   :  { %v19_v4 = vpop.xlane.xlu0 %18 }
  0x91   :  { %v24_v5 = vmul.f32 0.03125, %v19_v4 }
  0x93   :  { %v26_v6 = vsub.f32 %v14_v0, %v24_v5 }
  0x94   :  { %v22_v7 = vpop.xlane.xlu0 %21 }
  0x95   :  { %v25_v8 = vmul.f32 0.03125, %v22_v7  ;;  %v28_v9 = vmul.f32 %v26_v6, %v26_v6 }
  0x97   :  { %v27_v10 = vsub.f32 %v15_v1, %v25_v8  ;;  %v30_v11 = vsel %vm16_vm0, %v28_v9, 0.0 }
  0x98   :  { %31 = vadd.xlane.f32.xlu1 %v30_v11 }
  0x99   :  { %v29_v12 = vmul.f32 %v27_v10, %v27_v10 }
  0x9b   :  { %v33_v13 = vsel %vm16_vm0, %v29_v12, 0.0 }
  0x9c   :  { %34 = vadd.xlane.f32.xlu1 %v33_v13 }
 0x125   :  { %v32_v14 = vpop.xlane.xlu1 %31 }
 0x126   :  { %v36_v15 = vmul.f32 0.03125, %v32_v14 }
 0x128   :  { %v38_v16 = vadd.f32 1e-05, %v36_v15 }
 0x129   :  { %v35_v17 = vpop.xlane.xlu1 %34 }
 0x12a   :  { %70 = vrsqrt.f32 %v38_v16  ;;  %v37_v18 = vmul.f32 0.03125, %v35_v17 }
 0x12c   :  { %v39_v19 = vadd.f32 1e-05, %v37_v18 }
 0x12e   :  { %72 = vrsqrt.f32 %v39_v19 }
 0x134   :  { %v71_v20 = vpop.eup %70 }
 0x135   :  { %v42_v22 = vmul.f32 %v71_v20, %v26_v6 }
 0x137   :  { %v51_v24 = vmul.f32 %v68_v21, %v42_v22 }
 0x138   :  { %v73_v25 = vpop.eup %72 }
 0x139   :  { %v60_v26 = vadd.f32 %v69_v23, %v51_v24  ;;  %v43_v27 = vmul.f32 %v73_v25, %v27_v10 }
 0x13b   :  { %62 = vst.msk [vmem:[%s121_s3] sm:$0xff] %vm16_vm0, %v60_v26  ;;  %v52_v28 = vmul.f32 %v68_v21, %v43_v27 }
 0x13d   :  { %v61_v29 = vadd.f32 %v69_v23, %v52_v28 }
 0x13f   :  { %63 = vst.msk [vmem:[%s121_s3 + $0x8] sm:$0xff] %vm16_vm0, %v61_v29 }

// kernel: transformer_decoder_forward.34
= control target key start
LH: loop header
LB: loop body
LE: loop exit
PB: predicated region body
PF: predicated region fallthrough
CT: control target
= control target key end

     0   :  { %s958_s15 = smov 0   ;;  %s1067_s0 = inlined_call_operand.vmem [shape: f32[2,8,32], index: 0, kind: input, shape index: {}]   ;;  %s1068_s1 = inlined_call_operand.vmem [shape: f32[2,16,32], index: 1, kind: input, shape index: {}]   ;;  %s1069_s2 = inlined_call_operand.vmem [shape: f32[2,16,32], index: 2, kind: input, shape index: {}]   ;;  %s1070_s3 = inlined_call_operand.vmem [shape: f32[2,1,16], index: 3, kind: input, shape index: {}]   ;;  %s1071_s4 = inlined_call_operand.vmem [shape: f32[2,8,32], index: 4, kind: output, shape index: {}]  }
   0x1 LB: > { %s797_s16 = sadd.s32 4294967295, %s923_s15   ;;  %p801_p0 = scmp.ge.s32.totalorder %s923_s15, 1  ;;  %s923_s15 = sphi %s958_s15, %s14_s15  }
   0x2   : > { %p189_p1 = scmp.lt.s32.totalorder %s923_s15, 3 }
   0x4   : > { %p190_p2 = pnand %p801_p0, %p189_p1 }
   0x5   : > { %p226_p3 = scmp.lt.s32.totalorder (!%p190_p2), %s797_s16, 1  ;;  %v925_v0 = vmov (!%p190_p2), 0.0   ;;  %vm926_vm0 = vmmov (!%p190_p2), 0   ;;  %vm263_vm1 = vcmask (!%p190_p2), 64512   ;;  %vm310_vm2 = vcmask (!%p190_p2), 130048   ;;  %s927_s28 = smov (!%p190_p2), 120  }
   0x6   : > { %193 = sbr.rel (%p190_p2) target bundleno = 1477 (0x5c5), region = 36  ;;  %837 = vmatprep.subr.bf16.mxu0 (!%p190_p2), %v925_v0  ;;  %839 = vmatprep.mubr.msk.bf16.mxu0 (!%p190_p2), %vm926_vm0, %v925_v0  ;;  %s928_s29 = smov (!%p190_p2), 112   ;;  %vm707_vm3 = vcmask (!%p190_p2), 195584   ;;  %vm709_vm4 = vcmask (!%p190_p2), 261120  }
   0x7   : > { %843 = vmatprep.subr.bf16.mxu1 (!%p190_p2), %v925_v0  ;;  %845 = vmatprep.mubr.msk.bf16.mxu1 (!%p190_p2), %vm926_vm0, %v925_v0  ;;  %s929_s30 = smov (!%p190_p2), 104   ;;  %s930_s8 = smov (!%p190_p2), 8  }
   0x8   : > { %s931_s9 = smov (!%p190_p2), 16   ;;  %s932_s10 = smov (!%p190_p2), 24  }
   0xd   : > { %s1073_s16 = smov (!%p226_p3, %s797_s16), 1 }
   0xe   : > { %s819_s17 = sshll.u32 %s1073_s16, 4  ;;  %s802_s18 = sshll.u32 %s1073_s16, 3 }
   0xf   : > { %s234_s21 = scalar_lea.vmem %s1068_s1, %s819_s17  ;;  %s229_s24 = scalar_lea.vmem %s1067_s0, %s802_s18 }
  0x10   : > { %v249_v1 = vld [vmem:[%s234_s21] sm:$0xff]  ;;  %v250_v2 = vld [vmem:[%s234_s21 + $0x8] sm:$0xff]  ;;  %s242_s27 = scalar_lea.vmem %s1070_s3, %s1073_s16  ;;  %s239_s7 = scalar_lea.vmem %s1069_s2, %s819_s17 }
  0x11   : > { %v255_v3 = vpack.c.bf16 %v250_v2, %v249_v1  ;;  %v248_v5 = vld [vmem:[%s229_s24] sm:$0xff]  ;;  %v252_v20 = vld [vmem:[%s239_s7 + $0x8] sm:$0xff]  ;;  %s246_s13 = scalar_lea.vmem %s1071_s4, %s802_s18 }
  0x12   : > { %v254_v6 = vpack.c.bf16 %v248_v5, %v248_v5  ;;  %v995_v7 = vld [vmem:[%s242_s27] ss:$0 sm:$0xff] }
  0x13   : > { %v268_v4 = vsel %vm263_vm1, %v255_v3, 0  ;;  %370 = vrot.lane.b32.xlu1 %v255_v3, %s927_s28  ;;  %v251_v19 = vld [vmem:[%s239_s7] sm:$0xff] }
  0x14   : > { %838 = vmatpush3.bf16.xpose.msra.mxu0 %v268_v4  ;;  %v1010_v21 = vpack.c.bf16 %v252_v20, %v251_v19 }
  0x15   : > { %855 = vmatprep.subr.bf16.mxu0 %v925_v0 }
  0x16   : > { %844 = vmatpush3.bf16.msra.mxu1 %v1010_v21 }
  0x17   : > { %367 = vrot.lane.b32.xlu1 %v254_v6, %s927_s28  ;;  %849 = vmatprep.subr.bf16.mxu1 %v925_v0 }
  0x1b   : > { %840 = vmatmul.mubr.msk.bf16.vlgmr.msra.gmra.mrb[0].mxu0 %vm263_vm1, %v254_v6  ;;  %477 = vrot.lane.b32.xlu1 %v254_v6, %s928_s29 }
  0x1c   : > { %857 = vmatprep.mubr.msk.bf16.mxu0 %vm926_vm0, %v925_v0 }
  0x1f   : > { %587 = vrot.lane.b32.xlu1 %v255_v3, %s929_s30 }
  0x23   : > { %585 = vrot.lane.b32.xlu1 %v254_v6, %s929_s30 }
  0x85   : > { %v371_v24 = vpop.permute.xlu1 %370 }
  0x86   : > { %v376_v26 = vsel %vm263_vm1, %v371_v24, 0 }
  0x89   : > { %v368_v28 = vpop.permute.xlu1 %367 }
  0x8d   : > { %v478_v30 = vpop.permute.xlu1 %477 }
  0x91   : > { %v588_v32 = vpop.permute.xlu1 %587 }
  0x92   : > { %v593_v33 = vsel %vm263_vm1, %v588_v32, 0 }
  0x95   : > { %v586_v34 = vpop.permute.xlu1 %585 }
  0xee   : > { %v304_v8 = vpop.f32.mrb[0].mxu0 }
  0xef   : > { %v305_v9 = vadd.f32 %v995_v7, %v304_v8  ;;  %v841_v10 = vpop.f32.mrb[1].mxu0 }
  0xf0   : > { %v307_v11 = vpop.f32.mrb[2].mxu0 }
  0xf1   : > { %v842_v12 = vpop.f32.mrb[3].mxu0  ;;  %v311_v13 = vsel %vm310_vm2, %v305_v9, -inf }
  0xf2   : > { %312 = vmax.xlane.f32.xlu0 %v311_v13 }
 0x17f   : > { %v313_v14 = vpop.xlane.xlu0 %312 }
 0x180   : > { %v314_v15 = vsub.f32 %v305_v9, %v313_v14 }
 0x182   : > { %v315_v16 = vmul.f32 1.442695, %v314_v15 }
 0x184   : > { %901 = vpow2.f32 %v315_v16 }
 0x18e   : > { %v902_v17 = vpop.eup %901 }
 0x18f   : > { %v317_v18 = vsel %vm310_vm2, %v902_v17, 0.0 }
 0x190   : > { %318 = vadd.xlane.f32.xlu0 %v317_v18 }
 0x1a6   : > { %479 = vrot.lane.b32.xlu0 %v255_v3, %s928_s29 }
 0x21d   : > { %v319_v22 = vpop.xlane.xlu0 %318 }
 0x21e   : > { %903 = vrcp.f32 %v319_v22 }
 0x221   : > { %v480_v29 = vpop.permute.xlu0 %479 }
 0x222   : > { %v485_v31 = vsel %vm263_vm1, %v480_v29, 0 }
 0x228   : > { %v904_v23 = vpop.eup %903 }
 0x229   : > { %v321_v25 = vmul.f32 %v904_v23, %v902_v17 }
 0x22b   : > { %v322_v27 = vpack.c.bf16 %v321_v25, %v321_v25 }
 0x22d   : > { %846 = vmatmul.mubr.msk.bf16.vlgmr.msra.gmra.mrb[0].mxu1 %vm310_vm2, %v322_v27 }
 0x22e   : > { %850 = vmatpush3.bf16.xpose.msra.mxu1 %v376_v26  ;;  %851 = vmatprep.mubr.msk.bf16.mxu1 %vm926_vm0, %v925_v0 }
 0x22f   : > { %861 = vmatprep.subr.bf16.mxu1 %v925_v0 }
 0x235   : > { %852 = vmatmul.mubr.msk.bf16.vlgmr.msra.gmra.mrb[4].mxu1 %vm263_vm1, %v368_v28 }
 0x236   : > { %862 = vmatpush3.bf16.xpose.msra.mxu1 %v485_v31  ;;  %863 = vmatprep.mubr.msk.bf16.mxu1 %vm926_vm0, %v925_v0 }
 0x237   : > { %873 = vmatprep.subr.bf16.mxu1 %v925_v0 }
 0x23d   : > { %864 = vmatmul.mubr.msk.bf16.vlgmr.msra.gmra.mrb[8].mxu1 %vm263_vm1, %v478_v30 }
 0x23e   : > { %874 = vmatpush3.bf16.xpose.msra.mxu1 %v593_v33  ;;  %875 = vmatprep.mubr.msk.bf16.mxu1 %vm926_vm0, %v925_v0 }
 0x245   : > { %876 = vmatmul.mubr.msk.bf16.vlgmr.msra.gmra.mrb[12].mxu1 %vm263_vm1, %v586_v34 }
 0x300   : > { %v1030_v35 = vpop.f32.mrb[0].mxu1 }
 0x301   : > { %v847_v36 = vpop.f32.mrb[1].mxu1 }
 0x302   : > { %v363_v37 = vpop.f32.mrb[2].mxu1 }
 0x303   : > { %v848_v38 = vpop.f32.mrb[3].mxu1 }
 0x308   : > { %v412_v39 = vpop.f32.mrb[4].mxu1 }
 0x309   : > { %v413_v40 = vadd.f32 %v995_v7, %v412_v39  ;;  %v853_v41 = vpop.f32.mrb[5].mxu1 }
 0x30a   : > { %v415_v42 = vpop.f32.mrb[6].mxu1 }
 0x30b   : > { %v854_v43 = vpop.f32.mrb[7].mxu1  ;;  %v418_v44 = vsel %vm310_vm2, %v413_v40, -inf }
 0x30c   : > { %419 = vmax.xlane.f32.xlu1 %v418_v44 }
 0x310   : > { %v521_v45 = vpop.f32.mrb[8].mxu1 }
 0x311   : > { %v522_v46 = vadd.f32 %v995_v7, %v521_v45  ;;  %v865_v47 = vpop.f32.mrb[9].mxu1 }
 0x312   : > { %v524_v48 = vpop.f32.mrb[10].mxu1 }
 0x313   : > { %v527_v49 = vsel %vm310_vm2, %v522_v46, -inf  ;;  %v866_v50 = vpop.f32.mrb[11].mxu1 }
 0x314   : > { %528 = vmax.xlane.f32.xlu0 %v527_v49 }
 0x318   : > { %v629_v51 = vpop.f32.mrb[12].mxu1 }
 0x319   : > { %v630_v52 = vadd.f32 %v995_v7, %v629_v51  ;;  %v877_v53 = vpop.f32.mrb[13].mxu1 }
 0x31a   : > { %v632_v54 = vpop.f32.mrb[14].mxu1 }
 0x31b   : > { %v635_v55 = vsel %vm310_vm2, %v630_v52, -inf  ;;  %v878_v56 = vpop.f32.mrb[15].mxu1 }
 0x31c   : > { %636 = vmax.xlane.f32.xlu1 %v635_v55 }
 0x399   : > { %v420_v57 = vpop.xlane.xlu1 %419 }
 0x39a   : > { %v421_v58 = vsub.f32 %v413_v40, %v420_v57 }
 0x39c   : > { %v422_v59 = vmul.f32 1.442695, %v421_v58 }
 0x39e   : > { %905 = vpow2.f32 %v422_v59 }
 0x3a1   : > { %v529_v60 = vpop.xlane.xlu0 %528 }
 0x3a2   : > { %v530_v61 = vsub.f32 %v522_v46, %v529_v60 }
 0x3a4   : > { %v531_v62 = vmul.f32 1.442695, %v530_v61 }
 0x3a6   : > { %907 = vpow2.f32 %v531_v62 }
 0x3a8   : > { %v906_v63 = vpop.eup %905 }
 0x3a9   : > { %v424_v1 = vsel %vm310_vm2, %v906_v63, 0.0  ;;  %v637_v4 = vpop.xlane.xlu1 %636 }
 0x3aa   : > { %425 = vadd.xlane.f32.xlu1 %v424_v1  ;;  %v638_v5 = vsub.f32 %v630_v52, %v637_v4 }
 0x3ac   : > { %v639_v6 = vmul.f32 1.442695, %v638_v5 }
 0x3ae   : > { %909 = vpow2.f32 %v639_v6 }
 0x3b0   : > { %v908_v2 = vpop.eup %907 }
 0x3b1   : > { %v533_v3 = vsel %vm310_vm2, %v908_v2, 0.0 }
 0x3b2   : > { %534 = vadd.xlane.f32.xlu0 %v533_v3 }
 0x3b8   : > { %v910_v7 = vpop.eup %909 }
 0x3b9   : > { %v641_v8 = vsel %vm310_vm2, %v910_v7, 0.0 }
 0x3bb   : > { %539 = vrot.lane.b32.xlu1 %v1010_v21, %s928_s29 }
 0x3c8   : > { %431 = vrot.lane.b32.xlu0 %v1010_v21, %s927_s28 }
 0x3df   : > { %642 = vadd.xlane.f32.xlu1 %v641_v8 }
 0x3f0   : > { %647 = vrot.lane.b32.xlu1 %v1010_v21, %s929_s30 }
 0x437   : > { %v426_v9 = vpop.xlane.xlu1 %425 }
 0x438   : > { %911 = vrcp.f32 %v426_v9 }
 0x43b   : > { %v540_v15 = vpop.permute.xlu1 %539 }
 0x43f   : > { %v535_v10 = vpop.xlane.xlu0 %534 }
 0x440   : > { %913 = vrcp.f32 %v535_v10 }
 0x442   : > { %v912_v11 = vpop.eup %911 }
 0x443   : > { %v428_v12 = vmul.f32 %v912_v11, %v906_v63  ;;  %v432_v13 = vpop.permute.xlu0 %431 }
 0x444   : > { %856 = vmatpush3.bf16.msra.mxu0 %v432_v13 }
 0x445   : > { %v429_v14 = vpack.c.bf16 %v428_v12, %v428_v12  ;;  %867 = vmatprep.subr.bf16.mxu0 %v925_v0 }
 0x447   : > { %858 = vmatmul.mubr.msk.bf16.vlgmr.msra.gmra.mrb[4].mxu0 %vm310_vm2, %v429_v14 }
 0x448   : > { %868 = vmatpush3.bf16.msra.mxu0 %v540_v15  ;;  %869 = vmatprep.mubr.msk.bf16.mxu0 %vm926_vm0, %v925_v0 }
 0x449   : > { %879 = vmatprep.subr.bf16.mxu0 %v925_v0 }
 0x44a   : > { %v914_v16 = vpop.eup %913 }
 0x44b   : > { %v537_v17 = vmul.f32 %v914_v16, %v908_v2 }
 0x44d   : > { %v538_v18 = vpack.c.bf16 %v537_v17, %v537_v17 }
 0x44f   : > { %870 = vmatmul.mubr.msk.bf16.vlgmr.msra.gmra.mrb[8].mxu0 %vm310_vm2, %v538_v18 }
 0x450   : > { %881 = vmatprep.mubr.msk.bf16.mxu0 %vm926_vm0, %v925_v0 }
 0x46c   : > { %v643_v19 = vpop.xlane.xlu1 %642 }
 0x46d   : > { %915 = vrcp.f32 %v643_v19 }
 0x470   : > { %v648_v20 = vpop.permute.xlu1 %647 }
 0x471   : > { %880 = vmatpush3.bf16.msra.mxu0 %v648_v20 }
 0x477   : > { %v916_v21 = vpop.eup %915 }
 0x478   : > { %v645_v22 = vmul.f32 %v916_v21, %v910_v7 }
 0x47a   : > { %v646_v23 = vpack.c.bf16 %v645_v22, %v645_v22 }
 0x47c   : > { %882 = vmatmul.mubr.msk.bf16.vlgmr.msra.gmra.mrb[12].mxu0 %vm310_vm2, %v646_v23 }
 0x51a   : > { %v471_v24 = vpop.f32.mrb[4].mxu0 }
 0x51b   : > { %694 = vrot.lane.b32.xlu0 %v471_v24, %s930_s8  ;;  %v859_v25 = vpop.f32.mrb[5].mxu0 }
 0x51c   : > { %v474_v26 = vpop.f32.mrb[6].mxu0 }
 0x51d   : > { %v860_v27 = vpop.f32.mrb[7].mxu0 }
 0x522   : > { %v579_v28 = vpop.f32.mrb[8].mxu0 }
 0x523   : > { %698 = vrot.lane.b32.xlu1 %v579_v28, %s931_s9  ;;  %v871_v0 = vpop.f32.mrb[9].mxu0 }
 0x524   : > { %v582_v29 = vpop.f32.mrb[10].mxu0 }
 0x525   : > { %v872_v30 = vpop.f32.mrb[11].mxu0 }
 0x54f   : > { %v687_v31 = vpop.f32.mrb[12].mxu0 }
 0x550   : > { %702 = vrot.lane.b32.xlu0 %v687_v31, %s932_s10  ;;  %v883_v32 = vpop.f32.mrb[13].mxu0 }
 0x551   : > { %v690_v33 = vpop.f32.mrb[14].mxu0 }
 0x552   : > { %v884_v34 = vpop.f32.mrb[15].mxu0 }
 0x58d   : > { %v695_v36 = vpop.permute.xlu0 %694 }
 0x58e   : > { %v705_v38 = vsel %vm263_vm1, %v1030_v35, %v695_v36 }
 0x595   : > { %v699_v37 = vpop.permute.xlu1 %698 }
 0x596   : > { %v706_v39 = vsel %vm310_vm2, %v705_v38, %v699_v37 }
 0x5c2   : > { %v703_v40 = vpop.permute.xlu0 %702 }
 0x5c3   : > { %v708_v41 = vsel %vm707_vm3, %v706_v39, %v703_v40 }
 0x5c4   : > { %710 = vst.msk [vmem:[%s246_s13] sm:$0xff] %vm709_vm4, %v708_v41 }
 0x5c5 PF: > { %s14_s15 = sadd.s32 1, %s923_s15  }
 0x5c6   : > { %p11_p4 = scmp.ge.s32.totalorder %s14_s15, 4  }
 0x5c8   :  { %13 = sbr.rel (!%p11_p4) target bundleno = 1 (0x1), region = 75 }

</bundles_post_ra>
